<compile_context>
chip_gen: v7x
topology: tpu7x:2x2x1
jax: 0.10.0
libtpu: 0.0.40
codegen_flags: <defaults>
</compile_context>

<pallas_src>
import jax
import jax.numpy as jnp
from jax import lax
from jax.experimental import pallas as pl
from jax.experimental.pallas import tpu as pltpu


B_TILE = 8          # sublane-aligned batch tile
LANE = 128          # lane width / padding quantum


def _round_up(n, m):
    return ((n + m - 1) // m) * m


# --------------------------------------------------------------------------
# Kernel
# --------------------------------------------------------------------------
def _ecg_lstm_kernel(x_ref,                       # (T, B_TILE, Ip)
                     w0_ref, b0_ref,              # (Ip+Hp, 4Hp), (1, 4Hp)
                     w1_ref, b1_ref,              # (2Hp, 4Hp),   (1, 4Hp)
                     fc1w_ref, fc1b_ref,          # (T*Hp, F1p),  (1, F1p)
                     fc2w_ref, fc2b_ref,          # (F1p, NCp),   (1, NCp)
                     out_ref,                     # (B_TILE, NCp)
                     h1_slab_ref):                # VMEM scratch (B_TILE, T*Hp)
    T, B, _ = x_ref.shape
    Hp = b0_ref.shape[1] // 4

    # Hoisted: weights / biases read exactly once, stay resident across the
    # whole recurrence (no per-timestep vld / broadcast_in_dim).
    w0 = w0_ref[...]
    b0 = b0_ref[...]
    w1 = w1_ref[...]
    b1 = b1_ref[...]

    def cell(inp, c, w, b):
        # Single fused (B, K) @ (K, 4Hp) MXU dot per cell (x/h stacked on host).
        gates = jnp.dot(inp, w, preferred_element_type=jnp.float32) + b
        # Hp is a multiple of 128 -> each gate slice is whole-vreg aligned.
        i = jax.nn.sigmoid(gates[:, 0 * Hp:1 * Hp])
        f = jax.nn.sigmoid(gates[:, 1 * Hp:2 * Hp])
        g = jnp.tanh(gates[:, 2 * Hp:3 * Hp])
        o = jax.nn.sigmoid(gates[:, 3 * Hp:4 * Hp])
        c_new = f * c + i * g
        h_new = o * jnp.tanh(c_new)
        return h_new, c_new

    zeros = jnp.zeros((B, Hp), jnp.float32)   # h0/c0 start at zero (as in forward())

    def step(t, carry):
        h0, c0, h1, c1 = carry
        x_t = x_ref[t]                                       # (B, Ip)
        h0, c0 = cell(jnp.concatenate([x_t, h0], axis=-1), c0, w0, b0)
        h1, c1 = cell(jnp.concatenate([h0, h1], axis=-1), c1, w1, b1)
        col = pl.multiple_of(t * Hp, LANE)
        h1_slab_ref[:, pl.ds(col, Hp)] = h1                  # nn.Flatten slab
        return h0, c0, h1, c1

    lax.fori_loop(0, T, step, (zeros, zeros, zeros, zeros), unroll=True)

    # FC head: Flatten -> Linear -> ReLU -> (Dropout = identity) -> Linear
    flat = h1_slab_ref[...]                                  # (B, T*Hp)
    z = jnp.dot(flat, fc1w_ref[...], preferred_element_type=jnp.float32) + fc1b_ref[...]
    z = jnp.maximum(z, 0.0)                                  # ReLU
    # TODO(synk): nn.Dropout(p) treated as identity (eval-mode semantics).
    out_ref[...] = (jnp.dot(z, fc2w_ref[...], preferred_element_type=jnp.float32)
                    + fc2b_ref[...])


# --------------------------------------------------------------------------
# Host-side packing: fuse/ pad weights to lane-aligned layouts
# --------------------------------------------------------------------------
def pack_params(params, input_size, T):
    H = params["w_hh_l0"].shape[0]
    Hp = _round_up(H, LANE)
    Ip = _round_up(input_size, LANE)
    fc1_out = params["fc1_w"].shape[1]
    F1p = _round_up(fc1_out, LANE)
    nc = params["fc2_w"].shape[1]
    NCp = _round_up(nc, LANE)

    assert params["fc1_w"].shape[0] == T * H, (
        "fc head requires fc1_w rows == T*hidden (the PyTorch module only "
        "type-checks for T == 1)")

    def scatter_gates(dst, src, row_off):
        # src: (rows, 4H) in PyTorch [i,f,g,o] order -> Hp-aligned gate blocks.
        rows = src.shape[0]
        for g in range(4):
            dst = dst.at[row_off:row_off + rows,
                         g * Hp:g * Hp + H].set(src[:, g * H:(g + 1) * H])
        return dst

    # Layer 0: fused [x ; h] weight.
    w0 = jnp.zeros((Ip + Hp, 4 * Hp), jnp.float32)
    w0 = scatter_gates(w0, params["w_ih_l0"], 0)
    w0 = scatter_gates(w0, params["w_hh_l0"], Ip)
    b0 = scatter_gates(jnp.zeros((1, 4 * Hp), jnp.float32), params["b_l0"], 0)

    # Layer 1: fused [h0 ; h1] weight.
    w1 = jnp.zeros((2 * Hp, 4 * Hp), jnp.float32)
    w1 = scatter_gates(w1, params["w_ih_l1"], 0)
    w1 = scatter_gates(w1, params["w_hh_l1"], Hp)
    b1 = scatter_gates(jnp.zeros((1, 4 * Hp), jnp.float32), params["b_l1"], 0)

    # FC head, padded to lane-dense shapes.
    fc1w = jnp.zeros((T * Hp, F1p), jnp.float32)
    for t in range(T):
        fc1w = fc1w.at[t * Hp:t * Hp + H, :fc1_out].set(
            params["fc1_w"][t * H:(t + 1) * H, :])
    fc1b = jnp.zeros((1, F1p), jnp.float32).at[:, :fc1_out].set(params["fc1_b"])
    fc2w = jnp.zeros((F1p, NCp), jnp.float32).at[:fc1_out, :nc].set(params["fc2_w"])
    fc2b = jnp.zeros((1, NCp), jnp.float32).at[:, :nc].set(params["fc2_b"])

    return dict(w0=w0, b0=b0, w1=w1, b1=b1,
                fc1_w=fc1w, fc1_b=fc1b, fc2_w=fc2w, fc2_b=fc2b,
                Hp=Hp, Ip=Ip, F1p=F1p, NCp=NCp, nc=nc)


# --------------------------------------------------------------------------
# Wrapper
# --------------------------------------------------------------------------
def ecg_lstm_forward(x, params):
    B, T, input_size = x.shape
    pk = pack_params(params, input_size, T)
    Hp, Ip, F1p, NCp, nc = pk["Hp"], pk["Ip"], pk["F1p"], pk["NCp"], pk["nc"]
    Bp = _round_up(B, B_TILE)

    # Pad batch/feature dims, go time-major so the kernel can index x_ref[t].
    xp = jnp.zeros((Bp, T, Ip), jnp.float32)
    xp = xp.at[:B, :, :input_size].set(x.astype(jnp.float32))
    xp = jnp.transpose(xp, (1, 0, 2))                  # (T, Bp, Ip)

    k0 = Ip + Hp
    flops = int(2 * Bp * T * 4 * Hp * (k0 + 2 * Hp)
                + 2 * Bp * (T * Hp * F1p + F1p * NCp))
    transcendentals = int(Bp * T * 10 * Hp)
    bytes_accessed = int(4 * (xp.size + pk["w0"].size + pk["b0"].size
                              + pk["w1"].size + pk["b1"].size
                              + pk["fc1_w"].size + pk["fc1_b"].size
                              + pk["fc2_w"].size + pk["fc2_b"].size
                              + Bp * NCp))

    out = pl.pallas_call(
        _ecg_lstm_kernel,
        out_shape=jax.ShapeDtypeStruct((Bp, NCp), jnp.float32),
        grid_spec=pltpu.PrefetchScalarGridSpec(
            num_scalar_prefetch=0,
            grid=(Bp // B_TILE,),
            in_specs=[
                pl.BlockSpec((T, B_TILE, Ip), lambda b: (0, b, 0)),   # x (streamed per batch tile)
                pl.BlockSpec((k0, 4 * Hp), lambda b: (0, 0)),          # W0 (resident)
                pl.BlockSpec((1, 4 * Hp), lambda b: (0, 0)),           # b0
                pl.BlockSpec((2 * Hp, 4 * Hp), lambda b: (0, 0)),      # W1
                pl.BlockSpec((1, 4 * Hp), lambda b: (0, 0)),           # b1
                pl.BlockSpec((T * Hp, F1p), lambda b: (0, 0)),         # fc1_w
                pl.BlockSpec((1, F1p), lambda b: (0, 0)),              # fc1_b
                pl.BlockSpec((F1p, NCp), lambda b: (0, 0)),            # fc2_w
                pl.BlockSpec((1, NCp), lambda b: (0, 0)),              # fc2_b
            ],
            out_specs=pl.BlockSpec((B_TILE, NCp), lambda b: (b, 0)),
            scratch_shapes=[pltpu.VMEM((B_TILE, T * Hp), jnp.float32)],
        ),
        compiler_params=pltpu.CompilerParams(
            dimension_semantics=("parallel",),       # batch tiles shard across TCs
            vmem_limit_bytes=32 * 1024 * 1024,
        ),
        cost_estimate=pl.CostEstimate(flops=flops,
                                      transcendentals=transcendentals,
                                      bytes_accessed=bytes_accessed),
    )(xp, pk["w0"], pk["b0"], pk["w1"], pk["b1"],
      pk["fc1_w"], pk["fc1_b"], pk["fc2_w"], pk["fc2_b"])

    return out[:B, :nc]


# --------------------------------------------------------------------------
# Parameter init (PyTorch-like shapes, weights stored transposed) + reference
# --------------------------------------------------------------------------
def init_params(key, input_size, hidden_size, fc_sizes, num_classes):
    H = hidden_size
    ks = jax.random.split(key, 12)
    s_lstm = 1.0 / float(H) ** 0.5

    def u(k, shape, bound):
        return jax.random.uniform(k, shape, jnp.float32, -bound, bound)

    fc1_in, fc1_out = H, fc_sizes[0]
    fc2_in, fc2_out = fc_sizes[-1], num_classes
    s1 = 1.0 / float(fc1_in) ** 0.5
    s2 = 1.0 / float(fc2_in) ** 0.5
    return {
        # LSTM layer 0 (weights stored transposed: (in, 4H), gate order i,f,g,o)
        "w_ih_l0": u(ks[0], (input_size, 4 * H), s_lstm),
        "w_hh_l0": u(ks[1], (H, 4 * H), s_lstm),
        "b_l0": u(ks[2], (1, 4 * H), s_lstm) + u(ks[3], (1, 4 * H), s_lstm),  # b_ih + b_hh
        # LSTM layer 1
        "w_ih_l1": u(ks[4], (H, 4 * H), s_lstm),
        "w_hh_l1": u(ks[5], (H, 4 * H), s_lstm),
        "b_l1": u(ks[6], (1, 4 * H), s_lstm) + u(ks[7], (1, 4 * H), s_lstm),
        # FC head
        "fc1_w": u(ks[8], (fc1_in, fc1_out), s1),
        "fc1_b": u(ks[9], (1, fc1_out), s1),
        "fc2_w": u(ks[10], (fc2_in, fc2_out), s2),
        "fc2_b": u(ks[11], (1, fc2_out), s2),
    }


def reference_forward(x, params):
    """Pure-JAX mirror of the PyTorch forward (dropout = identity)."""
    B, T, _ = x.shape
    H = params["w_hh_l0"].shape[0]

    def cell(x_t, h, c, w_ih, w_hh, b):
        g = x_t @ w_ih + h @ w_hh + b
        i = jax.nn.sigmoid(g[:, 0 * H:1 * H])
        f = jax.nn.sigmoid(g[:, 1 * H:2 * H])
        gg = jnp.tanh(g[:, 2 * H:3 * H])
        o = jax.nn.sigmoid(g[:, 3 * H:4 * H])
        c = f * c + i * gg
        return o * jnp.tanh(c), c

    z = jnp.zeros((B, H), jnp.float32)
    h0, c0, h1, c1 = z, z, z, z
    outs = []
    for t in range(T):
        h0, c0 = cell(x[:, t, :], h0, c0, params["w_ih_l0"], params["w_hh_l0"], params["b_l0"])
        h1, c1 = cell(h0, h1, c1, params["w_ih_l1"], params["w_hh_l1"], params["b_l1"])
        outs.append(h1)
    flat = jnp.concatenate(outs, axis=-1)
    y = jnp.maximum(flat @ params["fc1_w"] + params["fc1_b"], 0.0)
    return y @ params["fc2_w"] + params["fc2_b"]


if __name__ == "__main__":
    B, T, INPUT, HIDDEN, NUM_CLASSES = 2, 1, 16, 32, 5
    FC_SIZES = [25]

    key = jax.random.PRNGKey(0)
    kx, kp = jax.random.split(key)
    x = jax.random.normal(kx, (B, T, INPUT), jnp.float32)
    params = init_params(kp, INPUT, HIDDEN, FC_SIZES, NUM_CLASSES)

    out = jax.block_until_ready(ecg_lstm_forward(x, params))
    ref = reference_forward(x, params)

    assert out.shape == (B, NUM_CLASSES), out.shape
    assert jnp.allclose(out, ref, atol=1e-5, rtol=1e-5), "mismatch vs pure-JAX reference"
    print("KERNEL_OK")
</pallas_src>

<mosaic_0001>
module attributes {stable_mosaic.version = 11 : i64} {
  func.func @_ecg_lstm_kernel(%arg0: i32, %arg1: memref<1x8x128xf32, #tpu.memory_space<vmem>>, %arg2: memref<256x512xf32, #tpu.memory_space<vmem>>, %arg3: memref<1x512xf32, #tpu.memory_space<vmem>>, %arg4: memref<256x512xf32, #tpu.memory_space<vmem>>, %arg5: memref<1x512xf32, #tpu.memory_space<vmem>>, %arg6: memref<128x128xf32, #tpu.memory_space<vmem>>, %arg7: memref<1x128xf32, #tpu.memory_space<vmem>>, %arg8: memref<128x128xf32, #tpu.memory_space<vmem>>, %arg9: memref<1x128xf32, #tpu.memory_space<vmem>>, %arg10: memref<8x128xf32, #tpu.memory_space<vmem>>, %arg11: memref<8x128xf32, #tpu.memory_space<vmem>>) attributes {dimension_semantics = [#tpu.dimension_semantics<parallel>], iteration_bounds = array<i64: 1>, scalar_prefetch = 0 : i64, scratch_operands = 1 : i64, tpu.core_type = #tpu.core_type<tc>, window_params = [{transform_indices = @transform_0, window_bounds = array<i64: 1, 8, 128>}, {pipeline_mode = #tpu.pipeline_mode<synchronous>, transform_indices = @transform_1, window_bounds = array<i64: 256, 512>}, {pipeline_mode = #tpu.pipeline_mode<synchronous>, transform_indices = @transform_2, window_bounds = array<i64: 1, 512>}, {pipeline_mode = #tpu.pipeline_mode<synchronous>, transform_indices = @transform_3, window_bounds = array<i64: 256, 512>}, {pipeline_mode = #tpu.pipeline_mode<synchronous>, transform_indices = @transform_4, window_bounds = array<i64: 1, 512>}, {pipeline_mode = #tpu.pipeline_mode<synchronous>, transform_indices = @transform_5, window_bounds = array<i64: 128, 128>}, {pipeline_mode = #tpu.pipeline_mode<synchronous>, transform_indices = @transform_6, window_bounds = array<i64: 1, 128>}, {pipeline_mode = #tpu.pipeline_mode<synchronous>, transform_indices = @transform_7, window_bounds = array<i64: 128, 128>}, {pipeline_mode = #tpu.pipeline_mode<synchronous>, transform_indices = @transform_8, window_bounds = array<i64: 1, 128>}, {transform_indices = @transform_9, window_bounds = array<i64: 8, 128>}]} {
    %c0 = arith.constant 0 : index
    %c0_0 = arith.constant 0 : index
    %0 = vector.load %arg2[%c0, %c0_0] : memref<256x512xf32, #tpu.memory_space<vmem>>, vector<256x512xf32>
    %c0_1 = arith.constant 0 : index
    %c0_2 = arith.constant 0 : index
    %1 = vector.load %arg3[%c0_1, %c0_2] : memref<1x512xf32, #tpu.memory_space<vmem>>, vector<1x512xf32>
    %c0_3 = arith.constant 0 : index
    %c0_4 = arith.constant 0 : index
    %2 = vector.load %arg4[%c0_3, %c0_4] : memref<256x512xf32, #tpu.memory_space<vmem>>, vector<256x512xf32>
    %c0_5 = arith.constant 0 : index
    %c0_6 = arith.constant 0 : index
    %3 = vector.load %arg5[%c0_5, %c0_6] : memref<1x512xf32, #tpu.memory_space<vmem>>, vector<1x512xf32>
    %cst = arith.constant 0.000000e+00 : f32
    %4 = vector.broadcast %cst : f32 to vector<8x128xf32>
    %c0_i32 = arith.constant 0 : i32
    %5 = arith.index_cast %c0_i32 : i32 to index
    %c0_7 = arith.constant 0 : index
    %c0_8 = arith.constant 0 : index
    %6 = vector.load %arg1[%5, %c0_7, %c0_8] : memref<1x8x128xf32, #tpu.memory_space<vmem>>, vector<1x8x128xf32>
    %7 = vector.shape_cast %6 : vector<1x8x128xf32> to vector<8x128xf32>
    %8 = tpu.concatenate %7, %4 in 1 : vector<8x128xf32>, vector<8x128xf32> -> vector<8x256xf32>
    %cst_9 = arith.constant dense<0.000000e+00> : vector<8x512xf32>
    %9 = tpu.matmul %8, %0, %cst_9 {dimension_numbers = #tpu.dot_dimension_numbers<[1], [0], [0], [1], [0, 0, 1, 1], [], []>} : vector<8x256xf32>, vector<256x512xf32>, vector<8x512xf32> -> vector<8x512xf32>
    %10 = vector.broadcast %1 : vector<1x512xf32> to vector<8x512xf32>
    %11 = arith.addf %9, %10 : vector<8x512xf32>
    %12 = vector.extract_strided_slice %11 {offsets = [0, 0], sizes = [8, 128], strides = [1, 1]} : vector<8x512xf32> to vector<8x128xf32>
    %13 = arith.negf %12 : vector<8x128xf32>
    %14 = math.exp %13 : vector<8x128xf32>
    %cst_10 = arith.constant 1.000000e+00 : f32
    %15 = vector.broadcast %cst_10 : f32 to vector<8x128xf32>
    %16 = arith.addf %15, %14 : vector<8x128xf32>
    %17 = arith.divf %15, %16 : vector<8x128xf32>
    %18 = vector.extract_strided_slice %11 {offsets = [0, 128], sizes = [8, 128], strides = [1, 1]} : vector<8x512xf32> to vector<8x128xf32>
    %19 = arith.negf %18 : vector<8x128xf32>
    %20 = math.exp %19 : vector<8x128xf32>
    %cst_11 = arith.constant 1.000000e+00 : f32
    %21 = vector.broadcast %cst_11 : f32 to vector<8x128xf32>
    %22 = arith.addf %21, %20 : vector<8x128xf32>
    %23 = arith.divf %21, %22 : vector<8x128xf32>
    %24 = vector.extract_strided_slice %11 {offsets = [0, 256], sizes = [8, 128], strides = [1, 1]} : vector<8x512xf32> to vector<8x128xf32>
    %25 = math.tanh %24 : vector<8x128xf32>
    %26 = vector.extract_strided_slice %11 {offsets = [0, 384], sizes = [8, 128], strides = [1, 1]} : vector<8x512xf32> to vector<8x128xf32>
    %27 = arith.negf %26 : vector<8x128xf32>
    %28 = math.exp %27 : vector<8x128xf32>
    %cst_12 = arith.constant 1.000000e+00 : f32
    %29 = vector.broadcast %cst_12 : f32 to vector<8x128xf32>
    %30 = arith.addf %29, %28 : vector<8x128xf32>
    %31 = arith.divf %29, %30 : vector<8x128xf32>
    %32 = arith.mulf %23, %4 : vector<8x128xf32>
    %33 = arith.mulf %17, %25 : vector<8x128xf32>
    %34 = arith.addf %32, %33 : vector<8x128xf32>
    %35 = math.tanh %34 : vector<8x128xf32>
    %36 = arith.mulf %31, %35 : vector<8x128xf32>
    %37 = tpu.concatenate %36, %4 in 1 : vector<8x128xf32>, vector<8x128xf32> -> vector<8x256xf32>
    %cst_13 = arith.constant dense<0.000000e+00> : vector<8x512xf32>
    %38 = tpu.matmul %37, %2, %cst_13 {dimension_numbers = #tpu.dot_dimension_numbers<[1], [0], [0], [1], [0, 0, 1, 1], [], []>} : vector<8x256xf32>, vector<256x512xf32>, vector<8x512xf32> -> vector<8x512xf32>
    %39 = vector.broadcast %3 : vector<1x512xf32> to vector<8x512xf32>
    %40 = arith.addf %38, %39 : vector<8x512xf32>
    %41 = vector.extract_strided_slice %40 {offsets = [0, 0], sizes = [8, 128], strides = [1, 1]} : vector<8x512xf32> to vector<8x128xf32>
    %42 = arith.negf %41 : vector<8x128xf32>
    %43 = math.exp %42 : vector<8x128xf32>
    %cst_14 = arith.constant 1.000000e+00 : f32
    %44 = vector.broadcast %cst_14 : f32 to vector<8x128xf32>
    %45 = arith.addf %44, %43 : vector<8x128xf32>
    %46 = arith.divf %44, %45 : vector<8x128xf32>
    %47 = vector.extract_strided_slice %40 {offsets = [0, 128], sizes = [8, 128], strides = [1, 1]} : vector<8x512xf32> to vector<8x128xf32>
    %48 = arith.negf %47 : vector<8x128xf32>
    %49 = math.exp %48 : vector<8x128xf32>
    %cst_15 = arith.constant 1.000000e+00 : f32
    %50 = vector.broadcast %cst_15 : f32 to vector<8x128xf32>
    %51 = arith.addf %50, %49 : vector<8x128xf32>
    %52 = arith.divf %50, %51 : vector<8x128xf32>
    %53 = vector.extract_strided_slice %40 {offsets = [0, 256], sizes = [8, 128], strides = [1, 1]} : vector<8x512xf32> to vector<8x128xf32>
    %54 = math.tanh %53 : vector<8x128xf32>
    %55 = vector.extract_strided_slice %40 {offsets = [0, 384], sizes = [8, 128], strides = [1, 1]} : vector<8x512xf32> to vector<8x128xf32>
    %56 = arith.negf %55 : vector<8x128xf32>
    %57 = math.exp %56 : vector<8x128xf32>
    %cst_16 = arith.constant 1.000000e+00 : f32
    %58 = vector.broadcast %cst_16 : f32 to vector<8x128xf32>
    %59 = arith.addf %58, %57 : vector<8x128xf32>
    %60 = arith.divf %58, %59 : vector<8x128xf32>
    %61 = arith.mulf %52, %4 : vector<8x128xf32>
    %62 = arith.mulf %46, %54 : vector<8x128xf32>
    %63 = arith.addf %61, %62 : vector<8x128xf32>
    %64 = math.tanh %63 : vector<8x128xf32>
    %65 = arith.mulf %60, %64 : vector<8x128xf32>
    %c128_i32 = arith.constant 128 : i32
    %66 = arith.muli %c0_i32, %c128_i32 : i32
    %67 = tpu.assume_multiple %66, 128 : i32
    %c0_17 = arith.constant 0 : index
    %68 = arith.index_cast %67 : i32 to index
    %69 = vector.load %arg11[%c0_17, %68] : memref<8x128xf32, #tpu.memory_space<vmem>>, vector<8x128xf32>
    tpu.vector_store %arg11[%c0_17, %68], %65 {strides = array<i32>} : memref<8x128xf32, #tpu.memory_space<vmem>>, vector<8x128xf32>,
    %c1_i32 = arith.constant 1 : i32
    %c0_18 = arith.constant 0 : index
    %c0_19 = arith.constant 0 : index
    %70 = vector.load %arg11[%c0_18, %c0_19] : memref<8x128xf32, #tpu.memory_space<vmem>>, vector<8x128xf32>
    %c0_20 = arith.constant 0 : index
    %c0_21 = arith.constant 0 : index
    %71 = vector.load %arg6[%c0_20, %c0_21] : memref<128x128xf32, #tpu.memory_space<vmem>>, vector<128x128xf32>
    %cst_22 = arith.constant dense<0.000000e+00> : vector<8x128xf32>
    %72 = tpu.matmul %70, %71, %cst_22 {dimension_numbers = #tpu.dot_dimension_numbers<[1], [0], [0], [1], [0, 0, 1, 1], [], []>} : vector<8x128xf32>, vector<128x128xf32>, vector<8x128xf32> -> vector<8x128xf32>
    %c0_23 = arith.constant 0 : index
    %c0_24 = arith.constant 0 : index
    %73 = vector.load %arg7[%c0_23, %c0_24] : memref<1x128xf32, #tpu.memory_space<vmem>>, vector<1x128xf32>
    %74 = vector.broadcast %73 : vector<1x128xf32> to vector<8x128xf32>
    %75 = arith.addf %72, %74 : vector<8x128xf32>
    %cst_25 = arith.constant 0.000000e+00 : f32
    %76 = vector.broadcast %cst_25 : f32 to vector<8x128xf32>
    %77 = arith.maximumf %75, %76 : vector<8x128xf32>
    %c0_26 = arith.constant 0 : index
    %c0_27 = arith.constant 0 : index
    %78 = vector.load %arg8[%c0_26, %c0_27] : memref<128x128xf32, #tpu.memory_space<vmem>>, vector<128x128xf32>
    %cst_28 = arith.constant dense<0.000000e+00> : vector<8x128xf32>
    %79 = tpu.matmul %77, %78, %cst_28 {dimension_numbers = #tpu.dot_dimension_numbers<[1], [0], [0], [1], [0, 0, 1, 1], [], []>} : vector<8x128xf32>, vector<128x128xf32>, vector<8x128xf32> -> vector<8x128xf32>
    %c0_29 = arith.constant 0 : index
    %c0_30 = arith.constant 0 : index
    %80 = vector.load %arg9[%c0_29, %c0_30] : memref<1x128xf32, #tpu.memory_space<vmem>>, vector<1x128xf32>
    %81 = vector.broadcast %80 : vector<1x128xf32> to vector<8x128xf32>
    %82 = arith.addf %79, %81 : vector<8x128xf32>
    %c0_31 = arith.constant 0 : index
    %c0_32 = arith.constant 0 : index
    %83 = vector.load %arg10[%c0_31, %c0_32] : memref<8x128xf32, #tpu.memory_space<vmem>>, vector<8x128xf32>
    tpu.vector_store %arg10[%c0_31, %c0_32], %82 {strides = array<i32>} : memref<8x128xf32, #tpu.memory_space<vmem>>, vector<8x128xf32>,
    return
  }
  func.func @transform_0(%arg0: i32) -> (i32, i32, i32) {
    %c0_i32 = arith.constant 0 : i32
    %c0_i32_0 = arith.constant 0 : i32
    %c0_i32_1 = arith.constant 0 : i32
    return %c0_i32, %arg0, %c0_i32_0 : i32, i32, i32
  }
  func.func @transform_1(%arg0: i32) -> (i32, i32) {
    %c0_i32 = arith.constant 0 : i32
    %c0_i32_0 = arith.constant 0 : i32
    %c0_i32_1 = arith.constant 0 : i32
    return %c0_i32, %c0_i32_0 : i32, i32
  }
  func.func @transform_2(%arg0: i32) -> (i32, i32) {
    %c0_i32 = arith.constant 0 : i32
    %c0_i32_0 = arith.constant 0 : i32
    %c0_i32_1 = arith.constant 0 : i32
    return %c0_i32, %c0_i32_0 : i32, i32
  }
  func.func @transform_3(%arg0: i32) -> (i32, i32) {
    %c0_i32 = arith.constant 0 : i32
    %c0_i32_0 = arith.constant 0 : i32
    %c0_i32_1 = arith.constant 0 : i32
    return %c0_i32, %c0_i32_0 : i32, i32
  }
  func.func @transform_4(%arg0: i32) -> (i32, i32) {
    %c0_i32 = arith.constant 0 : i32
    %c0_i32_0 = arith.constant 0 : i32
    %c0_i32_1 = arith.constant 0 : i32
    return %c0_i32, %c0_i32_0 : i32, i32
  }
  func.func @transform_5(%arg0: i32) -> (i32, i32) {
    %c0_i32 = arith.constant 0 : i32
    %c0_i32_0 = arith.constant 0 : i32
    %c0_i32_1 = arith.constant 0 : i32
    return %c0_i32, %c0_i32_0 : i32, i32
  }
  func.func @transform_6(%arg0: i32) -> (i32, i32) {
    %c0_i32 = arith.constant 0 : i32
    %c0_i32_0 = arith.constant 0 : i32
    %c0_i32_1 = arith.constant 0 : i32
    return %c0_i32, %c0_i32_0 : i32, i32
  }
  func.func @transform_7(%arg0: i32) -> (i32, i32) {
    %c0_i32 = arith.constant 0 : i32
    %c0_i32_0 = arith.constant 0 : i32
    %c0_i32_1 = arith.constant 0 : i32
    return %c0_i32, %c0_i32_0 : i32, i32
  }
  func.func @transform_8(%arg0: i32) -> (i32, i32) {
    %c0_i32 = arith.constant 0 : i32
    %c0_i32_0 = arith.constant 0 : i32
    %c0_i32_1 = arith.constant 0 : i32
    return %c0_i32, %c0_i32_0 : i32, i32
  }
  func.func @transform_9(%arg0: i32) -> (i32, i32) {
    %c0_i32 = arith.constant 0 : i32
    %c0_i32_0 = arith.constant 0 : i32
    return %arg0, %c0_i32 : i32, i32
  }
}

</mosaic_0001>

<bundles_post_ra>
// kernel: tpu_custom_call.1
= control target key start
LH: loop header
LB: loop body
LE: loop exit
PB: predicated region body
PF: predicated region fallthrough
CT: control target
= control target key end

     0   :  { %14 = vsyncpa [#allocation4], 0  ;;  %s1750_s0 = inlined_call_operand.hbm [shape: f32[1,8,128], index: 0, kind: input, shape index: {}]   ;;  %s1751_s1 = inlined_call_operand.hbm [shape: f32[256,512], index: 1, kind: input, shape index: {}]   ;;  %s1752_s2 = inlined_call_operand.vmem [shape: f32[1,512], index: 2, kind: input, shape index: {}]   ;;  %s1753_s3 = inlined_call_operand.hbm [shape: f32[256,512], index: 3, kind: input, shape index: {}]   ;;  %s1754_s4 = inlined_call_operand.vmem [shape: f32[1,512], index: 4, kind: input, shape index: {}]   ;;  %s1755_s5 = inlined_call_operand.hbm [shape: f32[128,128], index: 5, kind: input, shape index: {}]   ;;  %s1756_s6 = inlined_call_operand.vmem [shape: f32[1,128], index: 6, kind: input, shape index: {}]   ;;  %s1757_s7 = inlined_call_operand.hbm [shape: f32[128,128], index: 7, kind: input, shape index: {}]   ;;  %s1758_s8 = inlined_call_operand.vmem [shape: f32[1,128], index: 8, kind: input, shape index: {}]   ;;  %s1759_s9 = inlined_call_operand.hbm [shape: f32[8,128], index: 9, kind: output, shape index: {}]  }
   0x1   :  { %15 = vsyncpa [#allocation7], 0 }
   0x2   :  { %16 = vsyncpa [#allocation10], 0 }
   0x3   :  { %17 = vsyncpa [#allocation5], 0  ;;  %s1540_s30 = smov [#allocation6]   ;;  %s1400_s13 = scalar_lea.hbm %s1751_s1, 16384 }
   0x4   :  { %s33_s10 = sshll.u32 %s1540_s30, 4  ;;  %p1401_p0 = scmp.ne.s32.totalorder %s1751_s1, %s1400_s13  ;;  %s34_s10 = int_to_ptr.vmem [resolvable:$true] %s33_s10 }
   0x5   :  { %p1404_p1 = scmp.lt.u32.totalorder %s1400_s13, %s1751_s1 }
   0x7   :  { %p1406_p2 = pnand %p1404_p1, %p1401_p0 }
   0x9   :  { %1409 = shalt.err (!%p1406_p2)
}
   0xa   :  { %s1410_s18 = scalar_lea.vmem %s34_s10, 16384  ;;  %p1415_p4 = scmp.lt.s32.totalorder %s34_s10, %s34_s10 }
   0xb   :  { %p1411_p3 = scmp.ne.s32.totalorder %s34_s10, %s1410_s18  ;;  %p1416_p5 = scmp.lt.s32.totalorder %s1410_s18, %s1410_s18 }
   0xd   :  { %p1417_p6 = por %p1416_p5, %p1415_p4 }
   0xf   :  { %p1418_p7 = pnand %p1417_p6, %p1411_p3 }
  0x11   :  { %1421 = shalt.err (!%p1418_p7)
}
  0x12   :  { %s1541_s19 = smov 512   ;;  %s1542_s20 = smov 32  }
  0x13   :  { %39 = dma.hbm_to_vmem [thread:$0]  %s1751_s1, 16384, %s34_s10, [#allocation7], %s1541_s19, %s1541_s19, %s1542_s20  }
  0x14   :  { %s1543_s23 = smov [#allocation9]   ;;  %s1422_s27 = scalar_lea.hbm %s1755_s5, 2048 }
  0x15   :  { %s61_s24 = sshll.u32 %s1543_s23, 4  ;;  %p1423_p8 = scmp.ne.s32.totalorder %s1755_s5, %s1422_s27  ;;  %s62_s24 = int_to_ptr.vmem [resolvable:$true] %s61_s24 }
  0x16   :  { %p1426_p9 = scmp.lt.u32.totalorder %s1422_s27, %s1755_s5 }
  0x18   :  { %p1428_p10 = pnand %p1426_p9, %p1423_p8 }
  0x1a   :  { %1431 = shalt.err (!%p1428_p10)
}
  0x1b   :  { %s1432_s12 = scalar_lea.vmem %s62_s24, 2048  ;;  %p1437_p12 = scmp.lt.s32.totalorder %s62_s24, %s62_s24 }
  0x1c   :  { %p1433_p11 = scmp.ne.s32.totalorder %s62_s24, %s1432_s12  ;;  %p1438_p13 = scmp.lt.s32.totalorder %s1432_s12, %s1432_s12 }
  0x1e   :  { %p1439_p0 = por %p1438_p13, %p1437_p12 }
  0x20   :  { %p1440_p1 = pnand %p1439_p0, %p1433_p11 }
  0x22   :  { %1443 = shalt.err (!%p1440_p1)
}
  0x23   :  { %s1544_s1 = smov 128   ;;  %s1545_s10 = smov 8  }
  0x24   :  { %67 = dma.hbm_to_vmem [thread:$0]  %s1755_s5, 2048, %s62_s24, [#allocation10], %s1544_s1, %s1544_s1, %s1545_s10  }
  0x25   :  { %s1546_s15 = smov [#allocation3]   ;;  %s1547_s17 = smov [#allocation8]  }
  0x26   :  { %s24_s16 = sshll.u32 %s1546_s15, 4  ;;  %s47_s18 = sshll.u32 %s1547_s17, 4  ;;  %s25_s16 = int_to_ptr.vmem [resolvable:$true] %s24_s16  ;;  %s1633_s18 = int_to_ptr.vmem [resolvable:$true] %s47_s18 }
  0x27   :  { %s1444_s23 = scalar_lea.hbm %s1750_s0, 128 }
  0x28   :  { %p1445_p2 = scmp.ne.s32.totalorder %s1750_s0, %s1444_s23  ;;  %p1448_p3 = scmp.lt.u32.totalorder %s1444_s23, %s1750_s0 }
  0x2a   :  { %p1450_p4 = pnand %p1448_p3, %p1445_p2 }
  0x2c   :  { %1453 = shalt.err (!%p1450_p4)
}
  0x2d   :  { %s1454_s5 = scalar_lea.vmem %s25_s16, 128  ;;  %p1459_p6 = scmp.lt.s32.totalorder %s25_s16, %s25_s16 }
  0x2e   :  { %p1455_p5 = scmp.ne.s32.totalorder %s25_s16, %s1454_s5  ;;  %p1460_p7 = scmp.lt.s32.totalorder %s1454_s5, %s1454_s5 }
  0x30   :  { %p1461_p8 = por %p1460_p7, %p1459_p6 }
  0x32   :  { %p1462_p9 = pnand %p1461_p8, %p1455_p5 }
  0x34   :  { %1465 = shalt.err (!%p1462_p9)
}
  0x35   :  { %27 = dma.hbm_to_vmem [thread:$0]  %s1750_s0, 128, %s25_s16, [#allocation4]  }
  0x36   :  { %s1466_s12 = scalar_lea.hbm %s1753_s3, 16384 }
  0x37   :  { %p1467_p10 = scmp.ne.s32.totalorder %s1753_s3, %s1466_s12  ;;  %p1470_p11 = scmp.lt.u32.totalorder %s1466_s12, %s1753_s3 }
  0x39   :  { %p1472_p12 = pnand %p1470_p11, %p1467_p10 }
  0x3b   :  { %1475 = shalt.err (!%p1472_p12)
}
  0x3c   :  { %s1476_s21 = scalar_lea.vmem %s1633_s18, 16384  ;;  %p1481_p0 = scmp.lt.s32.totalorder %s1633_s18, %s1633_s18 }
  0x3d   :  { %p1477_p13 = scmp.ne.s32.totalorder %s1633_s18, %s1476_s21  ;;  %p1482_p1 = scmp.lt.s32.totalorder %s1476_s21, %s1476_s21 }
  0x3f   :  { %p1483_p2 = por %p1482_p1, %p1481_p0 }
  0x41   :  { %p1484_p3 = pnand %p1483_p2, %p1477_p13 }
  0x43   :  { %1487 = shalt.err (!%p1484_p3)
}
  0x44   :  { %53 = dma.hbm_to_vmem [thread:$0]  %s1753_s3, 16384, %s1633_s18, [#allocation7], %s1541_s19, %s1541_s19, %s1542_s20  }
  0x45   :  { %s1548_s22 = smov [#allocation11]   ;;  %s1488_s27 = scalar_lea.hbm %s1757_s7, 2048 }
  0x46   :  { %s75_s23 = sshll.u32 %s1548_s22, 4  ;;  %p1489_p4 = scmp.ne.s32.totalorder %s1757_s7, %s1488_s27  ;;  %s76_s23 = int_to_ptr.vmem [resolvable:$true] %s75_s23 }
  0x47   :  { %p1492_p5 = scmp.lt.u32.totalorder %s1488_s27, %s1757_s7 }
  0x49   :  { %p1494_p6 = pnand %p1492_p5, %p1489_p4 }
  0x4b   :  { %1497 = shalt.err (!%p1494_p6)
}
  0x4c   :  { %s1498_s30 = scalar_lea.vmem %s76_s23, 2048  ;;  %p1503_p8 = scmp.lt.s32.totalorder %s76_s23, %s76_s23 }
  0x4d   :  { %p1499_p7 = scmp.ne.s32.totalorder %s76_s23, %s1498_s30  ;;  %p1504_p9 = scmp.lt.s32.totalorder %s1498_s30, %s1498_s30 }
  0x4f   :  { %p1505_p10 = por %p1504_p9, %p1503_p8 }
  0x51   :  { %p1506_p11 = pnand %p1505_p10, %p1499_p7 }
  0x53   :  { %1509 = shalt.err (!%p1506_p11)
}
  0x54   :  { %81 = dma.hbm_to_vmem [thread:$0]  %s1757_s7, 2048, %s76_s23, [#allocation10], %s1544_s1, %s1544_s1, %s1545_s10  }
  0x55   :  { %1532 = dma.done.wait [#allocation4], 128  }
  0x56   :  { %1533 = vsyncadd [#allocation4], 4294967168 }
  0x57   :  { %1534 = dma.done.wait [#allocation7], 32768  }
  0x58   :  { %1535 = vsyncadd [#allocation7], 4294934528 }
  0x59   :  { %1536 = dma.done.wait [#allocation10], 4096  }
  0x5a   :  { %1537 = vsyncadd [#allocation10], 4294963200  ;;  %v1549_v0 = vmov 0.0   ;;  %v100_v1 = vld [vmem:[#allocation6 + $0x8] sm:$0xff]  ;;  %v99_v3 = vld [vmem:[#allocation6] sm:$0xff]  ;;  %vm1551_vm0 = vmmov 0  }
  0x5b   :  { %443 = vmatprep.mubr.f32.mxu0 %v1549_v0  ;;  %514 = vmatprep.mubr.f32.mxu1 %v1549_v0  ;;  %v104_v2 = vld [vmem:[#allocation6 + $0x28] sm:$0xff]  ;;  %v103_v5 = vld [vmem:[#allocation6 + $0x20] sm:$0xff]  ;;  %v102_v19 = vld [vmem:[#allocation6 + $0x18] sm:$0xff]  ;;  %s1552_s12 = smov [#allocation12]  }
  0x5c   :  { %v1051_v4 = vpack.c.bf16 %v104_v2, %v100_v1  ;;  %v108_v6 = vld [vmem:[#allocation6 + $0x48] sm:$0xff]  ;;  %v1053_v8 = vpack.c.bf16 %v103_v5, %v99_v3  ;;  %v107_v10 = vld [vmem:[#allocation6 + $0x40] sm:$0xff]  ;;  %v106_v20 = vld [vmem:[#allocation6 + $0x38] sm:$0xff]  ;;  %s928_s13 = sshll.u32 %s1552_s12, 4  ;;  %s929_s13 = int_to_ptr.vmem [resolvable:$true] %s928_s13 }
  0x5d   :  { %v112_v7 = vld [vmem:[#allocation6 + $0x68] sm:$0xff]  ;;  %v111_v11 = vld [vmem:[#allocation6 + $0x60] sm:$0xff]  ;;  %v1115_v22 = vpack.c.bf16 %v106_v20, %v102_v19  ;;  %v101_v23 = vld [vmem:[#allocation6 + $0x10] sm:$0xff]  ;;  %s1510_s14 = scalar_lea.vmem %s929_s13, 128  ;;  %p1515_p13 = scmp.lt.s32.totalorder %s929_s13, %s929_s13 }
  0x5e   :  { %v1055_v9 = vpack.c.bf16 %v112_v7, %v108_v6  ;;  %v116_v12 = vld [vmem:[#allocation6 + $0x88] sm:$0xff]  ;;  %1052 = vmatprep.subr.bf16.mxu0 %v1051_v4  ;;  %v1057_v14 = vpack.c.bf16 %v111_v11, %v107_v10  ;;  %v115_v15 = vld [vmem:[#allocation6 + $0x80] sm:$0xff]  ;;  %v105_v24 = vld [vmem:[#allocation6 + $0x30] sm:$0xff]  ;;  %p1511_p12 = scmp.ne.s32.totalorder %s929_s13, %s1510_s14  ;;  %p1516_p0 = scmp.lt.s32.totalorder %s1510_s14, %s1510_s14 }
  0x5f   :  { %v120_v13 = vld [vmem:[#allocation6 + $0xa8] sm:$0xff]  ;;  %1054 = vmatpush1.bf16.msra.mxu0 %v1053_v8  ;;  %v119_v16 = vld [vmem:[#allocation6 + $0xa0] sm:$0xff]  ;;  %v1117_v25 = vpack.c.bf16 %v105_v24, %v101_v23  ;;  %1116 = vmatprep.subr.bf16.mxu1 %v1115_v22  ;;  %v110_v27 = vld [vmem:[#allocation6 + $0x58] sm:$0xff] }
  0x60   :  { %1056 = vmatprep.subr.bf16.mxu0 %v1055_v9  ;;  %v1059_v17 = vpack.c.bf16 %v120_v13, %v116_v12  ;;  %v124_v18 = vld [vmem:[#allocation6 + $0xc8] sm:$0xff]  ;;  %v1061_v26 = vpack.c.bf16 %v119_v16, %v115_v15  ;;  %v114_v28 = vld [vmem:[#allocation6 + $0x78] sm:$0xff]  ;;  %v109_v29 = vld [vmem:[#allocation6 + $0x50] sm:$0xff]  ;;  %p1517_p1 = por %p1516_p0, %p1515_p13 }
  0x61   :  { %v128_v21 = vld [vmem:[#allocation6 + $0xe8] sm:$0xff]  ;;  %v123_v31 = vld [vmem:[#allocation6 + $0xc0] sm:$0xff]  ;;  %1118 = vmatpush1.bf16.msra.mxu1 %v1117_v25  ;;  %v1119_v33 = vpack.c.bf16 %v114_v28, %v110_v27  ;;  %v113_v34 = vld [vmem:[#allocation6 + $0x70] sm:$0xff] }
  0x62   :  { %v1063_v30 = vpack.c.bf16 %v128_v21, %v124_v18  ;;  %v127_v32 = vld [vmem:[#allocation6 + $0xe0] sm:$0xff]  ;;  %v132_v35 = vld [vmem:[#allocation6 + $0x108] sm:$0xff]  ;;  %v1121_v37 = vpack.c.bf16 %v113_v34, %v109_v29  ;;  %v118_v38 = vld [vmem:[#allocation6 + $0x98] sm:$0xff]  ;;  %p1518_p2 = pnand %p1517_p1, %p1511_p12 }
  0x63   :  { %1058 = vmatpush1.bf16.msra.mxu0 %v1057_v14  ;;  %v136_v36 = vld [vmem:[#allocation6 + $0x128] sm:$0xff]  ;;  %1120 = vmatprep.subr.bf16.mxu1 %v1119_v33  ;;  %v122_v39 = vld [vmem:[#allocation6 + $0xb8] sm:$0xff]  ;;  %v117_v40 = vld [vmem:[#allocation6 + $0x90] sm:$0xff]  ;;  %v1065_v42 = vpack.c.bf16 %v127_v32, %v123_v31 }
  0x64   :  { %1060 = vmatprep.subr.bf16.mxu0 %v1059_v17  ;;  %v121_v41 = vld [vmem:[#allocation6 + $0xb0] sm:$0xff]  ;;  %v131_v43 = vld [vmem:[#allocation6 + $0x100] sm:$0xff]  ;;  %v1123_v45 = vpack.c.bf16 %v122_v39, %v118_v38  ;;  %v1067_v46 = vpack.c.bf16 %v136_v36, %v132_v35  ;;  %v140_v47 = vld [vmem:[#allocation6 + $0x148] sm:$0xff] }
  0x65   :  { %v135_v44 = vld [vmem:[#allocation6 + $0x120] sm:$0xff]  ;;  %1122 = vmatpush1.bf16.msra.mxu1 %v1121_v37  ;;  %v1125_v48 = vpack.c.bf16 %v121_v41, %v117_v40  ;;  %v126_v49 = vld [vmem:[#allocation6 + $0xd8] sm:$0xff]  ;;  %v144_v51 = vld [vmem:[#allocation6 + $0x168] sm:$0xff] }
  0x66   :  { %v130_v50 = vld [vmem:[#allocation6 + $0xf8] sm:$0xff]  ;;  %1124 = vmatprep.subr.bf16.mxu1 %v1123_v45  ;;  %v125_v53 = vld [vmem:[#allocation6 + $0xd0] sm:$0xff]  ;;  %v1069_v55 = vpack.c.bf16 %v135_v44, %v131_v43  ;;  %v1071_v58 = vpack.c.bf16 %v144_v51, %v140_v47  ;;  %v139_v59 = vld [vmem:[#allocation6 + $0x140] sm:$0xff] }
  0x67   :  { %1062 = vmatpush1.bf16.msra.mxu0 %v1061_v26  ;;  %v1127_v52 = vpack.c.bf16 %v130_v50, %v126_v49  ;;  %v129_v54 = vld [vmem:[#allocation6 + $0xf0] sm:$0xff]  ;;  %v134_v56 = vld [vmem:[#allocation6 + $0x118] sm:$0xff]  ;;  %v143_v60 = vld [vmem:[#allocation6 + $0x160] sm:$0xff] }
  0x68   :  { %1064 = vmatprep.subr.bf16.mxu0 %v1063_v30  ;;  %v138_v57 = vld [vmem:[#allocation6 + $0x138] sm:$0xff]  ;;  %v148_v61 = vld [vmem:[#allocation6 + $0x188] sm:$0xff]  ;;  %v1129_v62 = vpack.c.bf16 %v129_v54, %v125_v53  ;;  %v133_v2 = vld [vmem:[#allocation6 + $0x110] sm:$0xff]  ;;  %v1073_v6 = vpack.c.bf16 %v143_v60, %v139_v59 }
  0x69   :  { %1126 = vmatpush1.bf16.msra.mxu1 %v1125_v48  ;;  %v152_v63 = vld [vmem:[#allocation6 + $0x1a8] sm:$0xff]  ;;  %v1131_v1 = vpack.c.bf16 %v138_v57, %v134_v56  ;;  %v137_v3 = vld [vmem:[#allocation6 + $0x130] sm:$0xff]  ;;  %v142_v4 = vld [vmem:[#allocation6 + $0x158] sm:$0xff] }
  0x6a   :  { %1128 = vmatprep.subr.bf16.mxu1 %v1127_v52  ;;  %v146_v5 = vld [vmem:[#allocation6 + $0x178] sm:$0xff]  ;;  %v1075_v7 = vpack.c.bf16 %v152_v63, %v148_v61  ;;  %v147_v8 = vld [vmem:[#allocation6 + $0x180] sm:$0xff]  ;;  %v156_v10 = vld [vmem:[#allocation6 + $0x1c8] sm:$0xff]  ;;  %v1133_v11 = vpack.c.bf16 %v137_v3, %v133_v2 }
  0x6b   :  { %1066 = vmatpush1.bf16.msra.mxu0 %v1065_v42  ;;  %v151_v9 = vld [vmem:[#allocation6 + $0x1a0] sm:$0xff]  ;;  %v160_v12 = vld [vmem:[#allocation6 + $0x1e8] sm:$0xff]  ;;  %v1135_v13 = vpack.c.bf16 %v146_v5, %v142_v4  ;;  %v141_v14 = vld [vmem:[#allocation6 + $0x150] sm:$0xff] }
  0x6c   :  { %1068 = vmatprep.subr.bf16.mxu0 %v1067_v46  ;;  %v145_v15 = vld [vmem:[#allocation6 + $0x170] sm:$0xff]  ;;  %v150_v16 = vld [vmem:[#allocation6 + $0x198] sm:$0xff]  ;;  %v1077_v18 = vpack.c.bf16 %v151_v9, %v147_v8  ;;  %v1079_v19 = vpack.c.bf16 %v160_v12, %v156_v10  ;;  %v155_v20 = vld [vmem:[#allocation6 + $0x1c0] sm:$0xff] }
  0x6d   :  { %1130 = vmatpush1.bf16.msra.mxu1 %v1129_v62  ;;  %v154_v17 = vld [vmem:[#allocation6 + $0x1b8] sm:$0xff]  ;;  %v159_v21 = vld [vmem:[#allocation6 + $0x1e0] sm:$0xff]  ;;  %v164_v22 = vld [vmem:[#allocation6 + $0x208] sm:$0xff]  ;;  %v1137_v23 = vpack.c.bf16 %v145_v15, %v141_v14 }
  0x6e   :  { %1132 = vmatprep.subr.bf16.mxu1 %v1131_v1  ;;  %v168_v24 = vld [vmem:[#allocation6 + $0x228] sm:$0xff]  ;;  %v1139_v25 = vpack.c.bf16 %v154_v17, %v150_v16  ;;  %v149_v26 = vld [vmem:[#allocation6 + $0x190] sm:$0xff]  ;;  %v158_v28 = vld [vmem:[#allocation6 + $0x1d8] sm:$0xff]  ;;  %v1081_v30 = vpack.c.bf16 %v159_v21, %v155_v20 }
  0x6f   :  { %1070 = vmatpush1.bf16.msra.mxu0 %v1069_v55  ;;  %v153_v27 = vld [vmem:[#allocation6 + $0x1b0] sm:$0xff]  ;;  %v162_v29 = vld [vmem:[#allocation6 + $0x1f8] sm:$0xff]  ;;  %v1083_v31 = vpack.c.bf16 %v168_v24, %v164_v22  ;;  %v163_v32 = vld [vmem:[#allocation6 + $0x200] sm:$0xff] }
  0x70   :  { %1072 = vmatprep.subr.bf16.mxu0 %v1071_v58  ;;  %v167_v33 = vld [vmem:[#allocation6 + $0x220] sm:$0xff]  ;;  %v172_v34 = vld [vmem:[#allocation6 + $0x248] sm:$0xff]  ;;  %v1141_v35 = vpack.c.bf16 %v153_v27, %v149_v26  ;;  %v1143_v37 = vpack.c.bf16 %v162_v29, %v158_v28  ;;  %v157_v38 = vld [vmem:[#allocation6 + $0x1d0] sm:$0xff] }
  0x71   :  { %1134 = vmatpush1.bf16.msra.mxu1 %v1133_v11  ;;  %v176_v36 = vld [vmem:[#allocation6 + $0x268] sm:$0xff]  ;;  %v161_v39 = vld [vmem:[#allocation6 + $0x1f0] sm:$0xff]  ;;  %v166_v40 = vld [vmem:[#allocation6 + $0x218] sm:$0xff]  ;;  %v1085_v42 = vpack.c.bf16 %v167_v33, %v163_v32 }
  0x72   :  { %1136 = vmatprep.subr.bf16.mxu1 %v1135_v13  ;;  %v170_v41 = vld [vmem:[#allocation6 + $0x238] sm:$0xff]  ;;  %v1087_v43 = vpack.c.bf16 %v176_v36, %v172_v34  ;;  %v171_v44 = vld [vmem:[#allocation6 + $0x240] sm:$0xff]  ;;  %v180_v46 = vld [vmem:[#allocation6 + $0x288] sm:$0xff]  ;;  %v1145_v47 = vpack.c.bf16 %v161_v39, %v157_v38 }
  0x73   :  { %1074 = vmatpush1.bf16.msra.mxu0 %v1073_v6  ;;  %v175_v45 = vld [vmem:[#allocation6 + $0x260] sm:$0xff]  ;;  %v184_v48 = vld [vmem:[#allocation6 + $0x2a8] sm:$0xff]  ;;  %v1147_v49 = vpack.c.bf16 %v170_v41, %v166_v40  ;;  %v165_v50 = vld [vmem:[#allocation6 + $0x210] sm:$0xff] }
  0x74   :  { %1076 = vmatprep.subr.bf16.mxu0 %v1075_v7  ;;  %v169_v51 = vld [vmem:[#allocation6 + $0x230] sm:$0xff]  ;;  %v174_v52 = vld [vmem:[#allocation6 + $0x258] sm:$0xff]  ;;  %v1089_v54 = vpack.c.bf16 %v175_v45, %v171_v44  ;;  %v1091_v55 = vpack.c.bf16 %v184_v48, %v180_v46  ;;  %v179_v56 = vld [vmem:[#allocation6 + $0x280] sm:$0xff] }
  0x75   :  { %1138 = vmatpush1.bf16.msra.mxu1 %v1137_v23  ;;  %v178_v53 = vld [vmem:[#allocation6 + $0x278] sm:$0xff]  ;;  %v183_v57 = vld [vmem:[#allocation6 + $0x2a0] sm:$0xff]  ;;  %v188_v58 = vld [vmem:[#allocation6 + $0x2c8] sm:$0xff]  ;;  %v1149_v59 = vpack.c.bf16 %v169_v51, %v165_v50 }
  0x76   :  { %1140 = vmatprep.subr.bf16.mxu1 %v1139_v25  ;;  %v192_v60 = vld [vmem:[#allocation6 + $0x2e8] sm:$0xff]  ;;  %v1151_v61 = vpack.c.bf16 %v178_v53, %v174_v52  ;;  %v173_v62 = vld [vmem:[#allocation6 + $0x250] sm:$0xff]  ;;  %v182_v1 = vld [vmem:[#allocation6 + $0x298] sm:$0xff]  ;;  %v1093_v3 = vpack.c.bf16 %v183_v57, %v179_v56 }
  0x77   :  { %1078 = vmatpush1.bf16.msra.mxu0 %v1077_v18  ;;  %v177_v63 = vld [vmem:[#allocation6 + $0x270] sm:$0xff]  ;;  %v186_v2 = vld [vmem:[#allocation6 + $0x2b8] sm:$0xff]  ;;  %v1095_v4 = vpack.c.bf16 %v192_v60, %v188_v58  ;;  %v187_v5 = vld [vmem:[#allocation6 + $0x2c0] sm:$0xff] }
  0x78   :  { %1080 = vmatprep.subr.bf16.mxu0 %v1079_v19  ;;  %v191_v6 = vld [vmem:[#allocation6 + $0x2e0] sm:$0xff]  ;;  %v196_v7 = vld [vmem:[#allocation6 + $0x308] sm:$0xff]  ;;  %v1153_v8 = vpack.c.bf16 %v177_v63, %v173_v62  ;;  %v1155_v10 = vpack.c.bf16 %v186_v2, %v182_v1  ;;  %v181_v11 = vld [vmem:[#allocation6 + $0x290] sm:$0xff] }
  0x79   :  { %1142 = vmatpush1.bf16.msra.mxu1 %v1141_v35  ;;  %v200_v9 = vld [vmem:[#allocation6 + $0x328] sm:$0xff]  ;;  %v185_v12 = vld [vmem:[#allocation6 + $0x2b0] sm:$0xff]  ;;  %v190_v13 = vld [vmem:[#allocation6 + $0x2d8] sm:$0xff]  ;;  %v1097_v15 = vpack.c.bf16 %v191_v6, %v187_v5 }
  0x7a   :  { %1144 = vmatprep.subr.bf16.mxu1 %v1143_v37  ;;  %v194_v14 = vld [vmem:[#allocation6 + $0x2f8] sm:$0xff]  ;;  %v1099_v16 = vpack.c.bf16 %v200_v9, %v196_v7  ;;  %v195_v17 = vld [vmem:[#allocation6 + $0x300] sm:$0xff]  ;;  %v204_v19 = vld [vmem:[#allocation6 + $0x348] sm:$0xff]  ;;  %v1157_v20 = vpack.c.bf16 %v185_v12, %v181_v11 }
  0x7b   :  { %1082 = vmatpush1.bf16.msra.mxu0 %v1081_v30  ;;  %v199_v18 = vld [vmem:[#allocation6 + $0x320] sm:$0xff]  ;;  %v208_v21 = vld [vmem:[#allocation6 + $0x368] sm:$0xff]  ;;  %v1159_v22 = vpack.c.bf16 %v194_v14, %v190_v13  ;;  %v189_v23 = vld [vmem:[#allocation6 + $0x2d0] sm:$0xff] }
  0x7c   :  { %1084 = vmatprep.subr.bf16.mxu0 %v1083_v31  ;;  %v193_v24 = vld [vmem:[#allocation6 + $0x2f0] sm:$0xff]  ;;  %v198_v25 = vld [vmem:[#allocation6 + $0x318] sm:$0xff]  ;;  %v1101_v27 = vpack.c.bf16 %v199_v18, %v195_v17  ;;  %v1103_v28 = vpack.c.bf16 %v208_v21, %v204_v19  ;;  %v203_v29 = vld [vmem:[#allocation6 + $0x340] sm:$0xff] }
  0x7d   :  { %1146 = vmatpush1.bf16.msra.mxu1 %v1145_v47  ;;  %v202_v26 = vld [vmem:[#allocation6 + $0x338] sm:$0xff]  ;;  %v207_v30 = vld [vmem:[#allocation6 + $0x360] sm:$0xff]  ;;  %v212_v31 = vld [vmem:[#allocation6 + $0x388] sm:$0xff]  ;;  %v1161_v32 = vpack.c.bf16 %v193_v24, %v189_v23 }
  0x7e   :  { %1148 = vmatprep.subr.bf16.mxu1 %v1147_v49  ;;  %v216_v33 = vld [vmem:[#allocation6 + $0x3a8] sm:$0xff]  ;;  %v1163_v34 = vpack.c.bf16 %v202_v26, %v198_v25  ;;  %v197_v35 = vld [vmem:[#allocation6 + $0x310] sm:$0xff]  ;;  %v206_v37 = vld [vmem:[#allocation6 + $0x358] sm:$0xff]  ;;  %v1105_v39 = vpack.c.bf16 %v207_v30, %v203_v29 }
  0x7f   :  { %1086 = vmatpush1.bf16.msra.mxu0 %v1085_v42  ;;  %v201_v36 = vld [vmem:[#allocation6 + $0x330] sm:$0xff]  ;;  %v210_v38 = vld [vmem:[#allocation6 + $0x378] sm:$0xff]  ;;  %v1107_v40 = vpack.c.bf16 %v216_v33, %v212_v31  ;;  %v211_v41 = vld [vmem:[#allocation6 + $0x380] sm:$0xff] }
  0x80   :  { %1088 = vmatprep.subr.bf16.mxu0 %v1087_v43  ;;  %v215_v42 = vld [vmem:[#allocation6 + $0x3a0] sm:$0xff]  ;;  %v220_v43 = vld [vmem:[#allocation6 + $0x3c8] sm:$0xff]  ;;  %v1165_v44 = vpack.c.bf16 %v201_v36, %v197_v35  ;;  %v1167_v46 = vpack.c.bf16 %v210_v38, %v206_v37  ;;  %v205_v47 = vld [vmem:[#allocation6 + $0x350] sm:$0xff] }
  0x81   :  { %1150 = vmatpush1.bf16.msra.mxu1 %v1149_v59  ;;  %v224_v45 = vld [vmem:[#allocation6 + $0x3e8] sm:$0xff]  ;;  %v209_v48 = vld [vmem:[#allocation6 + $0x370] sm:$0xff]  ;;  %v214_v49 = vld [vmem:[#allocation6 + $0x398] sm:$0xff]  ;;  %v1109_v51 = vpack.c.bf16 %v215_v42, %v211_v41 }
  0x82   :  { %1152 = vmatprep.subr.bf16.mxu1 %v1151_v61  ;;  %v218_v50 = vld [vmem:[#allocation6 + $0x3b8] sm:$0xff]  ;;  %v1111_v52 = vpack.c.bf16 %v224_v45, %v220_v43  ;;  %v219_v53 = vld [vmem:[#allocation6 + $0x3c0] sm:$0xff]  ;;  %v213_v56 = vld [vmem:[#allocation6 + $0x390] sm:$0xff] }
  0x83   :  { %1090 = vmatpush1.bf16.msra.mxu0 %v1089_v54  ;;  %v223_v54 = vld [vmem:[#allocation6 + $0x3e0] sm:$0xff]  ;;  %v1171_v57 = vpack.c.bf16 %v218_v50, %v214_v49  ;;  %v217_v58 = vld [vmem:[#allocation6 + $0x3b0] sm:$0xff]  ;;  %v229_v59 = vld [vmem:[#allocation8 + $0x8] sm:$0xff] }
  0x84   :  { %1092 = vmatprep.subr.bf16.mxu0 %v1091_v55  ;;  %v1169_v55 = vpack.c.bf16 %v209_v48, %v205_v47  ;;  %v233_v60 = vld [vmem:[#allocation8 + $0x28] sm:$0xff]  ;;  %v222_v61 = vld [vmem:[#allocation6 + $0x3d8] sm:$0xff]  ;;  %v1113_v63 = vpack.c.bf16 %v223_v54, %v219_v53  ;;  %v1173_v1 = vpack.c.bf16 %v217_v58, %v213_v56  ;;  %v221_v2 = vld [vmem:[#allocation6 + $0x3d0] sm:$0xff] }
  0x85   :  { %1154 = vmatpush1.bf16.msra.mxu1 %v1153_v8  ;;  %v226_v62 = vld [vmem:[#allocation6 + $0x3f8] sm:$0xff]  ;;  %v232_v5 = vld [vmem:[#allocation8 + $0x20] sm:$0xff]  ;;  %v225_v7 = vld [vmem:[#allocation6 + $0x3f0] sm:$0xff] }
  0x86   :  { %1156 = vmatprep.subr.bf16.mxu1 %v1155_v10  ;;  %v1175_v6 = vpack.c.bf16 %v226_v62, %v222_v61  ;;  %v237_v8 = vld [vmem:[#allocation8 + $0x48] sm:$0xff]  ;;  %v231_v10 = vld [vmem:[#allocation8 + $0x18] sm:$0xff]  ;;  %v1177_v14 = vpack.c.bf16 %v225_v7, %v221_v2  ;;  %v236_v17 = vld [vmem:[#allocation8 + $0x40] sm:$0xff] }
  0x87   :  { %1094 = vmatpush1.bf16.msra.mxu0 %v1093_v3  ;;  %v1179_v3 = vpack.c.bf16 %v233_v60, %v229_v59  ;;  %v241_v9 = vld [vmem:[#allocation8 + $0x68] sm:$0xff]  ;;  %v235_v11 = vld [vmem:[#allocation8 + $0x38] sm:$0xff]  ;;  %v240_v18 = vld [vmem:[#allocation8 + $0x60] sm:$0xff] }
  0x88   :  { %1096 = vmatprep.subr.bf16.mxu0 %v1095_v4  ;;  %v228_v4 = vld [vmem:[#allocation8] sm:$0xff]  ;;  %v357_v12 = vld [vmem:[#allocation3] sm:$0xff]  ;;  %v1243_v19 = vpack.c.bf16 %v235_v11, %v231_v10  ;;  %v245_v21 = vld [vmem:[#allocation8 + $0x88] sm:$0xff]  ;;  %v1185_v25 = vpack.c.bf16 %v240_v18, %v236_v17 }
  0x89   :  { %1158 = vmatpush1.bf16.msra.mxu1 %v1157_v20  ;;  %v1181_v13 = vpack.c.bf16 %v232_v5, %v228_v4  ;;  %v234_v20 = vld [vmem:[#allocation8 + $0x30] sm:$0xff]  ;;  %v239_v23 = vld [vmem:[#allocation8 + $0x58] sm:$0xff]  ;;  %v244_v29 = vld [vmem:[#allocation8 + $0x80] sm:$0xff] }
  0x8a   :  { %1160 = vmatprep.subr.bf16.mxu1 %v1159_v22  ;;  %v249_v22 = vld [vmem:[#allocation8 + $0xa8] sm:$0xff]  ;;  %v243_v24 = vld [vmem:[#allocation8 + $0x78] sm:$0xff]  ;;  %v248_v30 = vld [vmem:[#allocation8 + $0xa0] sm:$0xff] }
  0x8b   :  { %1098 = vmatpush1.bf16.msra.mxu0 %v1097_v15  ;;  %v230_v15 = vld [vmem:[#allocation8 + $0x10] sm:$0xff]  ;;  %v1247_v31 = vpack.c.bf16 %v243_v24, %v239_v23  ;;  %v253_v33 = vld [vmem:[#allocation8 + $0xc8] sm:$0xff]  ;;  %v247_v35 = vld [vmem:[#allocation8 + $0x98] sm:$0xff]  ;;  %v1189_v37 = vpack.c.bf16 %v248_v30, %v244_v29 }
  0x8c   :  { %1100 = vmatprep.subr.bf16.mxu0 %v1099_v16  ;;  %v1183_v16 = vpack.c.bf16 %v241_v9, %v237_v8  ;;  %v1245_v26 = vpack.c.bf16 %v234_v20, %v230_v15  ;;  %v251_v36 = vld [vmem:[#allocation8 + $0xb8] sm:$0xff]  ;;  %v252_v41 = vld [vmem:[#allocation8 + $0xc0] sm:$0xff]  ;;  %v261_v45 = vld [vmem:[#allocation8 + $0x108] sm:$0xff] }
  0x8d   :  { %1162 = vmatpush1.bf16.msra.mxu1 %v1161_v32  ;;  %v242_v32 = vld [vmem:[#allocation8 + $0x70] sm:$0xff]  ;;  %v256_v42 = vld [vmem:[#allocation8 + $0xe0] sm:$0xff]  ;;  %v1251_v43 = vpack.c.bf16 %v251_v36, %v247_v35  ;;  %v255_v47 = vld [vmem:[#allocation8 + $0xd8] sm:$0xff] }
  0x8e   :  { %1164 = vmatprep.subr.bf16.mxu1 %v1163_v34  ;;  %v257_v34 = vld [vmem:[#allocation8 + $0xe8] sm:$0xff]  ;;  %v259_v48 = vld [vmem:[#allocation8 + $0xf8] sm:$0xff]  ;;  %v1193_v49 = vpack.c.bf16 %v256_v42, %v252_v41  ;;  %v254_v53 = vld [vmem:[#allocation8 + $0xd0] sm:$0xff] }
  0x8f   :  { %1102 = vmatpush1.bf16.msra.mxu0 %v1101_v27  ;;  %v238_v27 = vld [vmem:[#allocation8 + $0x50] sm:$0xff]  ;;  %v267_v56 = vld [vmem:[#allocation8 + $0x138] sm:$0xff]  ;;  %v260_v59 = vld [vmem:[#allocation8 + $0x100] sm:$0xff] }
  0x90   :  { %1104 = vmatprep.subr.bf16.mxu0 %v1103_v28  ;;  %v1187_v28 = vpack.c.bf16 %v249_v22, %v245_v21  ;;  %v1249_v38 = vpack.c.bf16 %v242_v32, %v238_v27  ;;  %v258_v54 = vld [vmem:[#allocation8 + $0xf0] sm:$0xff]  ;;  %v264_v60 = vld [vmem:[#allocation8 + $0x120] sm:$0xff]  ;;  %v269_v2 = vld [vmem:[#allocation8 + $0x148] sm:$0xff] }
  0x91   :  { %1166 = vmatpush1.bf16.msra.mxu1 %v1165_v44  ;;  %v250_v44 = vld [vmem:[#allocation8 + $0xb0] sm:$0xff]  ;;  %v1197_v62 = vpack.c.bf16 %v264_v60, %v260_v59  ;;  %v271_v4 = vld [vmem:[#allocation8 + $0x158] sm:$0xff]  ;;  %v268_v7 = vld [vmem:[#allocation8 + $0x140] sm:$0xff] }
  0x92   :  { %1168 = vmatprep.subr.bf16.mxu1 %v1167_v46  ;;  %v265_v46 = vld [vmem:[#allocation8 + $0x128] sm:$0xff]  ;;  %v262_v61 = vld [vmem:[#allocation8 + $0x110] sm:$0xff]  ;;  %v272_v8 = vld [vmem:[#allocation8 + $0x160] sm:$0xff] }
  0x93   :  { %1106 = vmatpush1.bf16.msra.mxu0 %v1105_v39  ;;  %v246_v39 = vld [vmem:[#allocation8 + $0x90] sm:$0xff]  ;;  %v1201_v10 = vpack.c.bf16 %v272_v8, %v268_v7  ;;  %v281_v15 = vld [vmem:[#allocation8 + $0x1a8] sm:$0xff]  ;;  %v283_v18 = vld [vmem:[#allocation8 + $0x1b8] sm:$0xff] }
  0x94   :  { %1108 = vmatprep.subr.bf16.mxu0 %v1107_v40  ;;  %v1191_v40 = vpack.c.bf16 %v257_v34, %v253_v33  ;;  %v1253_v50 = vpack.c.bf16 %v250_v44, %v246_v39  ;;  %v270_v11 = vld [vmem:[#allocation8 + $0x150] sm:$0xff]  ;;  %v280_v20 = vld [vmem:[#allocation8 + $0x1a0] sm:$0xff]  ;;  %v289_v27 = vld [vmem:[#allocation8 + $0x1e8] sm:$0xff] }
  0x95   :  { %1170 = vmatpush1.bf16.msra.mxu1 %v1169_v55  ;;  %v263_v55 = vld [vmem:[#allocation8 + $0x118] sm:$0xff]  ;;  %v278_v23 = vld [vmem:[#allocation8 + $0x190] sm:$0xff]  ;;  %v288_v32 = vld [vmem:[#allocation8 + $0x1e0] sm:$0xff] }
  0x96   :  { %1172 = vmatprep.subr.bf16.mxu1 %v1171_v57  ;;  %v1257_v57 = vpack.c.bf16 %v258_v54, %v254_v53  ;;  %v1259_v58 = vpack.c.bf16 %v267_v56, %v263_v55  ;;  %v282_v24 = vld [vmem:[#allocation8 + $0x1b0] sm:$0xff]  ;;  %v291_v30 = vld [vmem:[#allocation8 + $0x1f8] sm:$0xff]  ;;  %v297_v39 = vld [vmem:[#allocation8 + $0x228] sm:$0xff] }
  0x97   :  { %1110 = vmatpush1.bf16.msra.mxu0 %v1109_v51  ;;  %v1195_v51 = vpack.c.bf16 %v265_v46, %v261_v45  ;;  %v286_v35 = vld [vmem:[#allocation8 + $0x1d0] sm:$0xff]  ;;  %v299_v42 = vld [vmem:[#allocation8 + $0x238] sm:$0xff]  ;;  %v296_v44 = vld [vmem:[#allocation8 + $0x220] sm:$0xff] }
  0x98   :  { %1112 = vmatprep.subr.bf16.mxu0 %v1111_v52  ;;  %v1255_v52 = vpack.c.bf16 %v259_v48, %v255_v47  ;;  %v290_v36 = vld [vmem:[#allocation8 + $0x1f0] sm:$0xff]  ;;  %v307_v54 = vld [vmem:[#allocation8 + $0x278] sm:$0xff]  ;;  %v300_v55 = vld [vmem:[#allocation8 + $0x240] sm:$0xff] }
  0x99   :  { %1174 = vmatpush1.bf16.msra.mxu1 %v1173_v1  ;;  %v294_v47 = vld [vmem:[#allocation8 + $0x210] sm:$0xff]  ;;  %v304_v56 = vld [vmem:[#allocation8 + $0x260] sm:$0xff] }
  0x9a   :  { %1176 = vmatprep.subr.bf16.mxu1 %v1175_v6  ;;  %v275_v6 = vld [vmem:[#allocation8 + $0x178] sm:$0xff]  ;;  %v298_v48 = vld [vmem:[#allocation8 + $0x230] sm:$0xff] }
  0x9b   :  { %1114 = vmatpush1.bf16.msra.mxu0 %v1113_v63  ;;  %v266_v63 = vld [vmem:[#allocation8 + $0x130] sm:$0xff]  ;;  %v1263_v9 = vpack.c.bf16 %v275_v6, %v271_v4  ;;  %v308_v4 = vld [vmem:[#allocation8 + $0x280] sm:$0xff] }
  0x9c   :  { %1180 = vmatprep.subr.bf16.mxu0 %v1179_v3  ;;  %v1261_v1 = vpack.c.bf16 %v266_v63, %v262_v61  ;;  %v273_v3 = vld [vmem:[#allocation8 + $0x168] sm:$0xff]  ;;  %v302_v59 = vld [vmem:[#allocation8 + $0x250] sm:$0xff] }
  0x9d   :  { %1178 = vmatpush1.bf16.msra.mxu1 %v1177_v14  ;;  %v1199_v5 = vpack.c.bf16 %v273_v3, %v269_v2  ;;  %v277_v14 = vld [vmem:[#allocation8 + $0x188] sm:$0xff]  ;;  %v306_v60 = vld [vmem:[#allocation8 + $0x270] sm:$0xff]  ;;  %v315_v3 = vld [vmem:[#allocation8 + $0x2b8] sm:$0xff] }
  0x9e   :  { %444 = vmatmul.mubr.f32.vlgmr.msra.gmra.mrb[0].mxu0 %v357_v12  ;;  %1244 = vmatprep.subr.bf16.mxu1 %v1243_v19  ;;  %v1203_v17 = vpack.c.bf16 %v281_v15, %v277_v14  ;;  %v276_v19 = vld [vmem:[#allocation8 + $0x180] sm:$0xff]  ;;  %v1281_v61 = vpack.c.bf16 %v306_v60, %v302_v59  ;;  %v313_v63 = vld [vmem:[#allocation8 + $0x2a8] sm:$0xff]  ;;  %v310_v8 = vld [vmem:[#allocation8 + $0x290] sm:$0xff] }
  0x9f   :  { %1182 = vmatpush1.bf16.msra.mxu0 %v1181_v13  ;;  %630 = vmatprep.mubr.f32.mxu0 %v1549_v0  ;;  %v1205_v22 = vpack.c.bf16 %v280_v20, %v276_v19  ;;  %v323_v15 = vld [vmem:[#allocation8 + $0x2f8] sm:$0xff]  ;;  %v318_v20 = vld [vmem:[#allocation8 + $0x2d0] sm:$0xff]  ;;  %v353_v59 = vld [vmem:[#allocation8 + $0x3e8] sm:$0xff] }
  0xa0   :  { %1184 = vmatprep.subr.bf16.mxu0 %v1183_v16  ;;  %515 = vmatmul.mubr.f32.vlgmr.msra.gmra.mrb[0].mxu1 %v357_v12  ;;  %v274_v12 = vld [vmem:[#allocation8 + $0x170] sm:$0xff]  ;;  %v279_v16 = vld [vmem:[#allocation8 + $0x198] sm:$0xff] }
  0xa1   :  { %1246 = vmatpush1.bf16.msra.mxu1 %v1245_v26  ;;  %701 = vmatprep.mubr.f32.mxu1 %v1549_v0  ;;  %v1265_v13 = vpack.c.bf16 %v274_v12, %v270_v11  ;;  %v1267_v21 = vpack.c.bf16 %v283_v18, %v279_v16  ;;  %v285_v26 = vld [vmem:[#allocation8 + $0x1c8] sm:$0xff]  ;;  %v316_v16 = vld [vmem:[#allocation8 + $0x2c0] sm:$0xff] }
  0xa2   :  { %1248 = vmatprep.subr.bf16.mxu1 %v1247_v31  ;;  %v1207_v29 = vpack.c.bf16 %v289_v27, %v285_v26  ;;  %v284_v31 = vld [vmem:[#allocation8 + $0x1c0] sm:$0xff]  ;;  %v317_v11 = vld [vmem:[#allocation8 + $0x2c8] sm:$0xff]  ;;  %v331_v27 = vld [vmem:[#allocation8 + $0x338] sm:$0xff] }
  0xa3   :  { %1186 = vmatpush1.bf16.msra.mxu0 %v1185_v25  ;;  %v1269_v25 = vpack.c.bf16 %v282_v24, %v278_v23  ;;  %v1209_v34 = vpack.c.bf16 %v288_v32, %v284_v31  ;;  %v321_v12 = vld [vmem:[#allocation8 + $0x2e8] sm:$0xff]  ;;  %v326_v32 = vld [vmem:[#allocation8 + $0x310] sm:$0xff] }
  0xa4   :  { %1188 = vmatprep.subr.bf16.mxu0 %v1187_v28  ;;  %v287_v28 = vld [vmem:[#allocation8 + $0x1d8] sm:$0xff]  ;;  %v1223_v14 = vpack.c.bf16 %v321_v12, %v317_v11  ;;  %v325_v23 = vld [vmem:[#allocation8 + $0x308] sm:$0xff] }
  0xa5   :  { %1250 = vmatpush1.bf16.msra.mxu1 %v1249_v38  ;;  %v1271_v33 = vpack.c.bf16 %v291_v30, %v287_v28  ;;  %v293_v38 = vld [vmem:[#allocation8 + $0x208] sm:$0xff]  ;;  %v324_v28 = vld [vmem:[#allocation8 + $0x300] sm:$0xff]  ;;  %v227_v11 = vld [vmem:[%s1752_s2] sm:$0xf] }
  0xa6   :  { %1252 = vmatprep.subr.bf16.mxu1 %v1251_v43  ;;  %v1211_v41 = vpack.c.bf16 %v297_v39, %v293_v38  ;;  %v292_v43 = vld [vmem:[#allocation8 + $0x200] sm:$0xff]  ;;  %v329_v24 = vld [vmem:[#allocation8 + $0x328] sm:$0xff]  ;;  %v339_v39 = vld [vmem:[#allocation8 + $0x378] sm:$0xff] }
  0xa7   :  { %1190 = vmatpush1.bf16.msra.mxu0 %v1189_v37  ;;  %v1273_v37 = vpack.c.bf16 %v290_v36, %v286_v35  ;;  %v1213_v46 = vpack.c.bf16 %v296_v44, %v292_v43  ;;  %v1227_v26 = vpack.c.bf16 %v329_v24, %v325_v23  ;;  %v333_v35 = vld [vmem:[#allocation8 + $0x348] sm:$0xff]  ;;  %v334_v44 = vld [vmem:[#allocation8 + $0x350] sm:$0xff] }
  0xa8   :  { %1192 = vmatprep.subr.bf16.mxu0 %v1191_v40  ;;  %v295_v40 = vld [vmem:[#allocation8 + $0x218] sm:$0xff]  ;;  %v337_v36 = vld [vmem:[#allocation8 + $0x368] sm:$0xff] }
  0xa9   :  { %1254 = vmatpush1.bf16.msra.mxu1 %v1253_v50  ;;  %v1275_v45 = vpack.c.bf16 %v299_v42, %v295_v40  ;;  %v301_v50 = vld [vmem:[#allocation8 + $0x248] sm:$0xff]  ;;  %v1231_v38 = vpack.c.bf16 %v337_v36, %v333_v35  ;;  %v332_v40 = vld [vmem:[#allocation8 + $0x340] sm:$0xff] }
  0xaa   :  { %1256 = vmatprep.subr.bf16.mxu1 %v1255_v52  ;;  %v303_v52 = vld [vmem:[#allocation8 + $0x258] sm:$0xff] }
  0xab   :  { %1194 = vmatpush1.bf16.msra.mxu0 %v1193_v49  ;;  %v1277_v49 = vpack.c.bf16 %v298_v48, %v294_v47  ;;  %v345_v48 = vld [vmem:[#allocation8 + $0x3a8] sm:$0xff] }
  0xac   :  { %1196 = vmatprep.subr.bf16.mxu0 %v1195_v51  ;;  %v305_v51 = vld [vmem:[#allocation8 + $0x268] sm:$0xff] }
  0xad   :  { %1258 = vmatpush1.bf16.msra.mxu1 %v1257_v57  ;;  %v1215_v53 = vpack.c.bf16 %v305_v51, %v301_v50  ;;  %v1279_v57 = vpack.c.bf16 %v307_v54, %v303_v52  ;;  %v347_v50 = vld [vmem:[#allocation8 + $0x3b8] sm:$0xff]  ;;  %v344_v54 = vld [vmem:[#allocation8 + $0x3a0] sm:$0xff] }
  0xae   :  { %1260 = vmatprep.subr.bf16.mxu1 %v1259_v58  ;;  %v1217_v58 = vpack.c.bf16 %v304_v56, %v300_v55  ;;  %v342_v55 = vld [vmem:[#allocation8 + $0x390] sm:$0xff] }
  0xaf   :  { %1198 = vmatpush1.bf16.msra.mxu0 %v1197_v62  ;;  %v309_v62 = vld [vmem:[#allocation8 + $0x288] sm:$0xff] }
  0xb0   :  { %1200 = vmatprep.subr.bf16.mxu0 %v1199_v5  ;;  %v1219_v2 = vpack.c.bf16 %v313_v63, %v309_v62  ;;  %v312_v5 = vld [vmem:[#allocation8 + $0x2a0] sm:$0xff]  ;;  %v351_v62 = vld [vmem:[#allocation8 + $0x3d8] sm:$0xff] }
  0xb1   :  { %1262 = vmatpush1.bf16.msra.mxu1 %v1261_v1  ;;  %v311_v1 = vld [vmem:[#allocation8 + $0x298] sm:$0xff]  ;;  %v1221_v7 = vpack.c.bf16 %v312_v5, %v308_v4  ;;  %v350_v4 = vld [vmem:[#allocation8 + $0x3d0] sm:$0xff] }
  0xb2   :  { %1264 = vmatprep.subr.bf16.mxu1 %v1263_v9  ;;  %v1283_v6 = vpack.c.bf16 %v315_v3, %v311_v1  ;;  %v314_v9 = vld [vmem:[#allocation8 + $0x2b0] sm:$0xff]  ;;  %v355_v63 = vld [vmem:[#allocation8 + $0x3f8] sm:$0xff]  ;;  %v348_v1 = vld [vmem:[#allocation8 + $0x3c0] sm:$0xff] }
  0xb3   :  { %1202 = vmatpush1.bf16.msra.mxu0 %v1201_v10  ;;  %v1285_v10 = vpack.c.bf16 %v314_v9, %v310_v8  ;;  %v352_v3 = vld [vmem:[#allocation8 + $0x3e0] sm:$0xff]  ;;  %v354_v5 = vld [vmem:[#allocation8 + $0x3f0] sm:$0xff]  ;;  %v359_v8 = vlaneseq }
  0xb4   :  { %1204 = vmatprep.subr.bf16.mxu0 %v1203_v17  ;;  %v320_v17 = vld [vmem:[#allocation8 + $0x2e0] sm:$0xff] }
  0xb5   :  { %1266 = vmatpush1.bf16.msra.mxu1 %v1265_v13  ;;  %v319_v13 = vld [vmem:[#allocation8 + $0x2d8] sm:$0xff]  ;;  %v1225_v19 = vpack.c.bf16 %v320_v17, %v316_v16  ;;  %v1686_v9 = vshrl.u32 %v359_v8, 7  ;;  %v829_v8 = vld [vmem:[#allocation11 + $0x8] sm:$0xff] }
  0xb6   :  { %1268 = vmatprep.subr.bf16.mxu1 %v1267_v21  ;;  %v1287_v18 = vpack.c.bf16 %v323_v15, %v319_v13  ;;  %v322_v21 = vld [vmem:[#allocation8 + $0x2f0] sm:$0xff] }
  0xb7   :  { %1206 = vmatpush1.bf16.msra.mxu0 %v1205_v22  ;;  %v1289_v22 = vpack.c.bf16 %v322_v21, %v318_v20  ;;  %v365_v12 = vsub.s32 1, %v1686_v9  ;;  %v373_v15 = vsub.s32 3, %v1686_v9  ;;  %v369_v23 = vsub.s32 2, %v1686_v9 }
  0xb8   :  { %1208 = vmatprep.subr.bf16.mxu0 %v1207_v29  ;;  %v328_v29 = vld [vmem:[#allocation8 + $0x320] sm:$0xff] }
  0xb9   :  { %1270 = vmatpush1.bf16.msra.mxu1 %v1269_v25  ;;  %v327_v25 = vld [vmem:[#allocation8 + $0x318] sm:$0xff]  ;;  %v1229_v31 = vpack.c.bf16 %v328_v29, %v324_v28  ;;  %v374_v21 = vrot.slane %v227_v11, %v373_v15 }
  0xba   :  { %1272 = vmatprep.subr.bf16.mxu1 %v1271_v33  ;;  %v1291_v30 = vpack.c.bf16 %v331_v27, %v327_v25  ;;  %v330_v33 = vld [vmem:[#allocation8 + $0x330] sm:$0xff]  ;;  %v370_v27 = vrot.slane %v227_v11, %v369_v23 }
  0xbb   :  { %1210 = vmatpush1.bf16.msra.mxu0 %v1209_v34  ;;  %v1293_v34 = vpack.c.bf16 %v330_v33, %v326_v32 }
  0xbc   :  { %1212 = vmatprep.subr.bf16.mxu0 %v1211_v41  ;;  %v336_v41 = vld [vmem:[#allocation8 + $0x360] sm:$0xff] }
  0xbd   :  { %1274 = vmatpush1.bf16.msra.mxu1 %v1273_v37  ;;  %v335_v37 = vld [vmem:[#allocation8 + $0x358] sm:$0xff]  ;;  %v1233_v43 = vpack.c.bf16 %v336_v41, %v332_v40 }
  0xbe   :  { %1276 = vmatprep.subr.bf16.mxu1 %v1275_v45  ;;  %v1295_v42 = vpack.c.bf16 %v339_v39, %v335_v37  ;;  %v338_v45 = vld [vmem:[#allocation8 + $0x370] sm:$0xff] }
  0xbf   :  { %1214 = vmatpush1.bf16.msra.mxu0 %v1213_v46  ;;  %v341_v46 = vld [vmem:[#allocation8 + $0x388] sm:$0xff]  ;;  %v1297_v47 = vpack.c.bf16 %v338_v45, %v334_v44  ;;  %v734_v45 = vld [vmem:[#allocation9] sm:$0xff] }
  0xc0   :  { %1216 = vmatprep.subr.bf16.mxu0 %v1215_v53  ;;  %v1235_v51 = vpack.c.bf16 %v345_v48, %v341_v46  ;;  %v340_v53 = vld [vmem:[#allocation8 + $0x380] sm:$0xff]  ;;  %v735_v46 = vld [vmem:[#allocation9 + $0x8] sm:$0xff]  ;;  %v1550_v48 = vmov 0.0|0.0  }
  0xc1   :  { %1278 = vmatpush1.bf16.msra.mxu1 %v1277_v49  ;;  %v343_v49 = vld [vmem:[#allocation8 + $0x398] sm:$0xff]  ;;  %v1237_v56 = vpack.c.bf16 %v344_v54, %v340_v53  ;;  %v739_v53 = vld [vmem:[#allocation9 + $0x28] sm:$0xff] }
  0xc2   :  { %1280 = vmatprep.subr.bf16.mxu1 %v1279_v57  ;;  %v1299_v52 = vpack.c.bf16 %v347_v50, %v343_v49  ;;  %v346_v57 = vld [vmem:[#allocation8 + $0x3b0] sm:$0xff]  ;;  %v737_v50 = vld [vmem:[#allocation9 + $0x18] sm:$0xff] }
  0xc3   :  { %1218 = vmatpush1.bf16.msra.mxu0 %v1217_v58  ;;  %v349_v58 = vld [vmem:[#allocation8 + $0x3c8] sm:$0xff]  ;;  %v1301_v60 = vpack.c.bf16 %v346_v57, %v342_v55  ;;  %v736_v49 = vld [vmem:[#allocation9 + $0x10] sm:$0xff] }
  0xc4   :  { %1220 = vmatprep.subr.bf16.mxu0 %v1219_v2  ;;  %v1303_v2 = vpack.c.bf16 %v355_v63, %v351_v62  ;;  %v740_v55 = vld [vmem:[#allocation9 + $0x30] sm:$0xff]  ;;  %v745_v62 = vld [vmem:[#allocation9 + $0x58] sm:$0xff]  ;;  %v746_v63 = vld [vmem:[#allocation9 + $0x60] sm:$0xff] }
  0xc5   :  { %1282 = vmatpush1.bf16.msra.mxu1 %v1281_v61  ;;  %v1239_v61 = vpack.c.bf16 %v353_v59, %v349_v58  ;;  %v742_v58 = vld [vmem:[#allocation9 + $0x40] sm:$0xff]  ;;  %v743_v59 = vld [vmem:[#allocation9 + $0x48] sm:$0xff] }
  0xc6   :  { %1284 = vmatprep.subr.bf16.mxu1 %v1283_v6  ;;  %v1241_v6 = vpack.c.bf16 %v352_v3, %v348_v1 }
  0xc7   :  { %1222 = vmatpush1.bf16.msra.mxu0 %v1221_v7  ;;  %v1305_v7 = vpack.c.bf16 %v354_v5, %v350_v4  ;;  %v748_v4 = vld [vmem:[#allocation9 + $0x70] sm:$0xff]  ;;  %v749_v5 = vld [vmem:[#allocation9 + $0x78] sm:$0xff] }
  0xc8   :  { %1224 = vmatprep.subr.bf16.mxu0 %v1223_v14  ;;  %v366_v14 = vrot.slane %v227_v11, %v365_v12 }
  0xc9   :  { %1286 = vmatpush1.bf16.msra.mxu1 %v1285_v10  ;;  %v361_v10 = vsub.s32 0, %v1686_v9 }
  0xca   :  { %1288 = vmatprep.subr.bf16.mxu1 %v1287_v18 }
  0xcb   :  { %1226 = vmatpush1.bf16.msra.mxu0 %v1225_v19  ;;  %v362_v13 = vrot.slane %v227_v11, %v361_v10  ;;  %v830_v11 = vld [vmem:[#allocation11 + $0x10] sm:$0xff] }
  0xcc   :  { %1228 = vmatprep.subr.bf16.mxu0 %v1227_v26 }
  0xcd   :  { %1290 = vmatpush1.bf16.msra.mxu1 %v1289_v22 }
  0xce   :  { %1292 = vmatprep.subr.bf16.mxu1 %v1291_v30 }
  0xcf   :  { %1230 = vmatpush1.bf16.msra.mxu0 %v1229_v31 }
  0xd0   :  { %1232 = vmatprep.subr.bf16.mxu0 %v1231_v38 }
  0xd1   :  { %1294 = vmatpush1.bf16.msra.mxu1 %v1293_v34 }
  0xd2   :  { %1296 = vmatprep.subr.bf16.mxu1 %v1295_v42 }
  0xd3   :  { %1234 = vmatpush1.bf16.msra.mxu0 %v1233_v43 }
  0xd4   :  { %1236 = vmatprep.subr.bf16.mxu0 %v1235_v51  ;;  %v1311_v51 = vpack.c.bf16 %v737_v50, %v736_v49 }
  0xd5   :  { %1298 = vmatpush1.bf16.msra.mxu1 %v1297_v47  ;;  %v1308_v47 = vpack.c.bf16 %v735_v46, %v734_v45 }
  0xd6   :  { %1300 = vmatprep.subr.bf16.mxu1 %v1299_v52  ;;  %v738_v52 = vld [vmem:[#allocation9 + $0x20] sm:$0xff] }
  0xd7   :  { %1238 = vmatpush1.bf16.msra.mxu0 %v1237_v56  ;;  %v1314_v54 = vpack.c.bf16 %v739_v53, %v738_v52  ;;  %v741_v56 = vld [vmem:[#allocation9 + $0x38] sm:$0xff] }
  0xd8   :  { %1240 = vmatprep.subr.bf16.mxu0 %v1239_v61  ;;  %v1317_v57 = vpack.c.bf16 %v741_v56, %v740_v55  ;;  %v744_v61 = vld [vmem:[#allocation9 + $0x50] sm:$0xff] }
  0xd9   :  { %1302 = vmatpush1.bf16.msra.mxu1 %v1301_v60  ;;  %v1320_v60 = vpack.c.bf16 %v743_v59, %v742_v58  ;;  %v1323_v1 = vpack.c.bf16 %v745_v62, %v744_v61  ;;  %v842_v58 = vld [vmem:[#allocation11 + $0x70] sm:$0xff]  ;;  %v843_v59 = vld [vmem:[#allocation11 + $0x78] sm:$0xff] }
  0xda   :  { %1304 = vmatprep.subr.bf16.mxu1 %v1303_v2  ;;  %v747_v2 = vld [vmem:[#allocation9 + $0x68] sm:$0xff]  ;;  %v945_v61 = vld [vmem:[%s1756_s6] ss:$0 sm:$0xff] }
  0xdb   :  { %1242 = vmatpush1.bf16.msra.mxu0 %v1241_v6  ;;  %v1326_v3 = vpack.c.bf16 %v747_v2, %v746_v63  ;;  %v1329_v6 = vpack.c.bf16 %v749_v5, %v748_v4 }
  0xdc   :  { %1307 = vmatprep.subr.bf16.mxu0 %v1550_v48 }
  0xdd   :  { %1306 = vmatpush1.bf16.msra.mxu1 %v1305_v7  ;;  %v828_v7 = vld [vmem:[#allocation11] sm:$0xff] }
  0xde   :  { %1331 = vmatprep.subr.bf16.mxu1 %v1550_v48 }
 0x171   :  { %v445_v16 = vpop.f32.mrb[0].mxu0 }
 0x172   :  { %v446_v17 = vadd.f32 %v445_v16, %v362_v13  ;;  %v447_v18 = vpop.f32.mrb[1].mxu0  ;;  %v1332_v13 = vpack.c.bf16 %v829_v8, %v828_v7 }
 0x173   :  { %v448_v19 = vadd.f32 %v447_v18, %v366_v14  ;;  %v516_v24 = vpop.f32.mrb[0].mxu1  ;;  %v831_v14 = vld [vmem:[#allocation11 + $0x18] sm:$0xff] }
 0x174   :  { %v939_v20 = vmul.f32 -1.442695, %v446_v17  ;;  %v518_v25 = vpop.f32.mrb[1].mxu1  ;;  %v517_v29 = vadd.f32 %v516_v24, %v370_v27  ;;  %v1335_v16 = vpack.c.bf16 %v831_v14, %v830_v11  ;;  %v833_v17 = vld [vmem:[#allocation11 + $0x28] sm:$0xff]  ;;  %v839_v27 = vld [vmem:[#allocation11 + $0x58] sm:$0xff] }
 0x175   :  { %v940_v22 = vmul.f32 -1.442695, %v448_v19  ;;  %v519_v26 = vadd.f32 %v518_v25, %v374_v21  ;;  %v834_v19 = vld [vmem:[#allocation11 + $0x30] sm:$0xff]  ;;  %v837_v24 = vld [vmem:[#allocation11 + $0x48] sm:$0xff] }
 0x176   :  { %1368 = vpow2.f32 %v939_v20  ;;  %v835_v20 = vld [vmem:[#allocation11 + $0x38] sm:$0xff] }
 0x177   :  { %1370 = vpow2.f32 %v940_v22  ;;  %v941_v28 = vmul.f32 -1.442695, %v519_v26  ;;  %v1341_v21 = vpack.c.bf16 %v835_v20, %v834_v19  ;;  %v836_v22 = vld [vmem:[#allocation11 + $0x40] sm:$0xff]  ;;  %v838_v26 = vld [vmem:[#allocation11 + $0x50] sm:$0xff] }
 0x178   :  { %v1344_v25 = vpack.c.bf16 %v837_v24, %v836_v22 }
 0x179   :  { %1372 = vpow2.f32 %v941_v28  ;;  %v1347_v28 = vpack.c.bf16 %v839_v27, %v838_v26 }
 0x17a   :  { %1374 = vtanh.f32 %v517_v29  ;;  %v840_v29 = vld [vmem:[#allocation11 + $0x60] sm:$0xff] }
 0x180   :  { %v1369_v30 = vpop.eup %1368 }
 0x181   :  { %v1371_v31 = vpop.eup %1370  ;;  %v524_v32 = vadd.f32 1.0, %v1369_v30  ;;  %v841_v30 = vld [vmem:[#allocation11 + $0x68] sm:$0xff] }
 0x182   :  { %v530_v33 = vadd.f32 1.0, %v1371_v31  ;;  %v1350_v31 = vpack.c.bf16 %v841_v30, %v840_v29 }
 0x183   :  { %1376 = vrcp.f32 %v524_v32  ;;  %v1373_v34 = vpop.eup %1372  ;;  %v356_v32 = vld [vmem:[%s1754_s4] sm:$0xf] }
 0x184   :  { %1378 = vrcp.f32 %v530_v33  ;;  %v1375_v35 = vpop.eup %1374  ;;  %v537_v37 = vadd.f32 1.0, %v1373_v34  ;;  %v549_v33 = vrot.slane %v356_v32, %v361_v10  ;;  %v553_v34 = vrot.slane %v356_v32, %v365_v12 }
 0x185   :  { %v557_v10 = vrot.slane %v356_v32, %v369_v23 }
 0x186   :  { %1380 = vrcp.f32 %v537_v37 }
 0x18d   :  { %v1377_v36 = vpop.eup %1376 }
 0x18e   :  { %v1379_v38 = vpop.eup %1378  ;;  %v541_v39 = vmul.f32 %v1377_v36, %v1375_v35 }
 0x18f   :  { %v540_v40 = vmul.f32 0.0, %v1379_v38 }
 0x190   :  { %v1381_v42 = vpop.eup %1380 }
 0x191   :  { %v542_v41 = vadd.f32 %v541_v39, %v540_v40 }
 0x193   :  { %1382 = vtanh.f32 %v542_v41 }
 0x19d   :  { %v1383_v43 = vpop.eup %1382 }
 0x19e   :  { %v544_v44 = vmul.f32 %v1383_v43, %v1381_v42  ;;  %v561_v43 = vrot.slane %v356_v32, %v373_v15 }
 0x1a0   :  { %631 = vmatmul.mubr.f32.vlgmr.msra.gmra.mrb[2].mxu0 %v544_v44  ;;  %702 = vmatmul.mubr.f32.vlgmr.msra.gmra.mrb[2].mxu1 %v544_v44 }
 0x1a1   :  { %1309 = vmatpush3.bf16.msra.mxu0 %v1308_v47  ;;  %1013 = vmatprep.mubr.msk.f32.mxu0 %vm1551_vm0, %v1549_v0 }
 0x1a2   :  { %1310 = vmatprep.subr.bf16.mxu0 %v1550_v48  ;;  %1048 = vmatprep.mubr.msk.f32.mxu1 %vm1551_vm0, %v1549_v0  ;;  %v832_v0 = vld [vmem:[#allocation11 + $0x20] sm:$0xff] }
 0x1a3   :  { %1333 = vmatpush3.bf16.msra.mxu1 %v1332_v13  ;;  %v1338_v18 = vpack.c.bf16 %v833_v17, %v832_v0 }
 0x1a4   :  { %1334 = vmatprep.subr.bf16.mxu1 %v1550_v48 }
 0x1a5   :  { %1312 = vmatpush3.bf16.msra.mxu0 %v1311_v51 }
 0x1a6   :  { %1313 = vmatprep.subr.bf16.mxu0 %v1550_v48 }
 0x1a7   :  { %1336 = vmatpush3.bf16.msra.mxu1 %v1335_v16 }
 0x1a8   :  { %1337 = vmatprep.subr.bf16.mxu1 %v1550_v48 }
 0x1a9   :  { %1315 = vmatpush3.bf16.msra.mxu0 %v1314_v54 }
 0x1aa   :  { %1316 = vmatprep.subr.bf16.mxu0 %v1550_v48 }
 0x1ab   :  { %1339 = vmatpush3.bf16.msra.mxu1 %v1338_v18 }
 0x1ac   :  { %1340 = vmatprep.subr.bf16.mxu1 %v1550_v48 }
 0x1ad   :  { %1318 = vmatpush3.bf16.msra.mxu0 %v1317_v57 }
 0x1ae   :  { %1319 = vmatprep.subr.bf16.mxu0 %v1550_v48 }
 0x1af   :  { %1342 = vmatpush3.bf16.msra.mxu1 %v1341_v21 }
 0x1b0   :  { %1343 = vmatprep.subr.bf16.mxu1 %v1550_v48 }
 0x1b1   :  { %1321 = vmatpush3.bf16.msra.mxu0 %v1320_v60  ;;  %v1353_v60 = vpack.c.bf16 %v843_v59, %v842_v58 }
 0x1b2   :  { %1322 = vmatprep.subr.bf16.mxu0 %v1550_v48 }
 0x1b3   :  { %1345 = vmatpush3.bf16.msra.mxu1 %v1344_v25 }
 0x1b4   :  { %1346 = vmatprep.subr.bf16.mxu1 %v1550_v48 }
 0x1b5   :  { %1324 = vmatpush3.bf16.msra.mxu0 %v1323_v1 }
 0x1b6   :  { %1325 = vmatprep.subr.bf16.mxu0 %v1550_v48 }
 0x1b7   :  { %1348 = vmatpush3.bf16.msra.mxu1 %v1347_v28 }
 0x1b8   :  { %1349 = vmatprep.subr.bf16.mxu1 %v1550_v48 }
 0x1b9   :  { %1327 = vmatpush3.bf16.msra.mxu0 %v1326_v3  ;;  %v946_v3 = vld [vmem:[%s1758_s8] ss:$0 sm:$0xff] }
 0x1ba   :  { %1328 = vmatprep.subr.bf16.mxu0 %v1550_v48 }
 0x1bb   :  { %1351 = vmatpush3.bf16.msra.mxu1 %v1350_v31 }
 0x1bc   :  { %1352 = vmatprep.subr.bf16.mxu1 %v1550_v48 }
 0x1bd   :  { %1330 = vmatpush3.bf16.msra.mxu0 %v1329_v6 }
 0x1bf   :  { %1354 = vmatpush3.bf16.msra.mxu1 %v1353_v60 }
 0x273   :  { %v632_v35 = vpop.f32.mrb[2].mxu0  ;;  %v703_v36 = vpop.f32.mrb[2].mxu1 }
 0x274   :  { %v633_v37 = vadd.f32 %v632_v35, %v549_v33  ;;  %v634_v38 = vpop.f32.mrb[3].mxu0  ;;  %v705_v39 = vpop.f32.mrb[3].mxu1  ;;  %v704_v46 = vadd.f32 %v703_v36, %v557_v10 }
 0x275   :  { %v635_v40 = vadd.f32 %v634_v38, %v553_v34  ;;  %v706_v44 = vadd.f32 %v705_v39, %v561_v43 }
 0x276   :  { %v942_v41 = vmul.f32 -1.442695, %v633_v37 }
 0x277   :  { %v943_v42 = vmul.f32 -1.442695, %v635_v40  ;;  %v944_v45 = vmul.f32 -1.442695, %v706_v44 }
 0x278   :  { %1384 = vpow2.f32 %v942_v41 }
 0x279   :  { %1386 = vpow2.f32 %v943_v42 }
 0x27a   :  { %1388 = vpow2.f32 %v944_v45 }
 0x27b   :  { %1390 = vtanh.f32 %v704_v46 }
 0x282   :  { %v1385_v12 = vpop.eup %1384 }
 0x283   :  { %v1387_v47 = vpop.eup %1386  ;;  %v711_v48 = vadd.f32 1.0, %v1385_v12 }
 0x284   :  { %v717_v49 = vadd.f32 1.0, %v1387_v47  ;;  %v1389_v50 = vpop.eup %1388 }
 0x285   :  { %1392 = vrcp.f32 %v711_v48  ;;  %v1391_v51 = vpop.eup %1390  ;;  %v724_v54 = vadd.f32 1.0, %v1389_v50 }
 0x286   :  { %1394 = vrcp.f32 %v717_v49 }
 0x287   :  { %1396 = vrcp.f32 %v724_v54 }
 0x28f   :  { %v1393_v52 = vpop.eup %1392 }
 0x290   :  { %v1395_v15 = vpop.eup %1394  ;;  %v728_v53 = vmul.f32 %v1393_v52, %v1391_v51 }
 0x291   :  { %v727_v55 = vmul.f32 0.0, %v1395_v15  ;;  %v1397_v9 = vpop.eup %1396 }
 0x293   :  { %v729_v56 = vadd.f32 %v728_v53, %v727_v55 }
 0x295   :  { %1398 = vtanh.f32 %v729_v56 }
 0x29f   :  { %v1399_v23 = vpop.eup %1398 }
 0x2a0   :  { %v731_v57 = vmul.f32 %v1399_v23, %v1397_v9 }
 0x2a2   :  { %1014 = vmatmul.mubr.f32.vlgmr.msra.gmra.mrb[4].mxu0 %v731_v57 }
 0x375   :  { %v823_v62 = vpop.f32.mrb[4].mxu0 }
 0x376   :  { %v824_v63 = vadd.f32 %v945_v61, %v823_v62  ;;  %v1015_v1 = vpop.f32.mrb[5].mxu0 }
 0x378   :  { %v827_v2 = vmax.f32 %v824_v63, 0.0 }
 0x37a   :  { %1049 = vmatmul.mubr.f32.vlgmr.msra.gmra.mrb[4].mxu1 %v827_v2 }
 0x44d   :  { %v917_v4 = vpop.f32.mrb[4].mxu1 }
 0x44e   :  { %v918_v5 = vadd.f32 %v946_v3, %v917_v4  ;;  %v1050_v6 = vpop.f32.mrb[5].mxu1 }
 0x450   :  { %921 = vst [vmem:[#allocation12] sm:$0xff] %v918_v5 }
 0x451   :  { %1521 = shalt.err (!%p1518_p2)
}
 0x452   :  { %s1522_s17 = scalar_lea.hbm %s1759_s9, 128 }
 0x453   :  { %p1523_p3 = scmp.ne.s32.totalorder %s1759_s9, %s1522_s17  ;;  %p1526_p4 = scmp.lt.u32.totalorder %s1522_s17, %s1759_s9 }
 0x455   :  { %p1528_p5 = pnand %p1526_p4, %p1523_p3 }
 0x457   :  { %1531 = shalt.err (!%p1528_p5)
}
 0x458   :  { %931 = dma.vmem_to_hbm [thread:$0]  %s929_s13, 128, %s1759_s9, [#allocation5]  }
 0x459   :  { %1538 = dma.done.wait [#allocation5], 128  }
 0x45a   :  { %1539 = vsyncadd [#allocation5], 4294967168 }
 0x45b   :  { %935 = vsyncpa [#allocation4], 1 }
 0x45c   :  { %936 = vsyncpa [#allocation7], 1 }
 0x45d   :  { %937 = vsyncpa [#allocation10], 1 }
 0x45e   :  { %938 = vsyncpa [#allocation5], 1 }

</bundles_post_ra>
